<compile_context>
chip_gen: v7x
topology: tpu7x:2x2x1
jax: 0.10.0
libtpu: 0.0.40
codegen_flags: <defaults>
</compile_context>

<pallas_src>
import jax
import jax.numpy as jnp
from jax.experimental import pallas as pl
from jax.experimental.pallas import tpu as pltpu  # noqa: F401  (TPU backend)

# ----- mini-BERT config (small shapes, same structure as bert-base) -----
BATCH = 2
SEQ = 8
HIDDEN = 32
HEADS = 2
HEAD_DIM = HIDDEN // HEADS
INTERMEDIATE = 64
LAYERS = 2
VOCAB = 64
MAX_POS = 16
EPS = 1e-12


# ---------------------------------------------------------------------------
# One fused Pallas kernel for the entire forward pass
# ---------------------------------------------------------------------------
def _bert_forward_kernel(
    emb_ref, bias_ref,
    emb_g_ref, emb_b_ref,
    qkv_w_ref, qkv_b_ref,
    o_w_ref, o_b_ref,
    ln1_g_ref, ln1_b_ref,
    i_w_ref, i_b_ref,
    f_w_ref, f_b_ref,
    ln2_g_ref, ln2_b_ref,
    pool_w_ref, pool_b_ref,
    cls_w_ref, cls_b_ref,
    out_ref,
):
    def layernorm(x, g, b):
        mu = jnp.mean(x, axis=-1, keepdims=True)
        xc = x - mu
        var = jnp.mean(xc * xc, axis=-1, keepdims=True)
        return xc * jax.lax.rsqrt(var + EPS) * g + b

    # Embedding LayerNorm.
    h = layernorm(emb_ref[...], emb_g_ref[...], emb_b_ref[...])      # (B*S, H)
    bias = bias_ref[...]                                             # (B*S, B*S)
    scale = 1.0 / (HEAD_DIM ** 0.5)

    # Encoder layers (static unroll; LAYERS is small and weights are stacked).
    for l in range(LAYERS):
        # --- fused QKV projection (one MXU matmul instead of three) ---
        qkv = jnp.dot(h, qkv_w_ref[l], preferred_element_type=jnp.float32)
        qkv = qkv + qkv_b_ref[l]
        # Fold the attention scale into Q once per layer.
        q = qkv[:, 0 * HIDDEN:1 * HIDDEN] * scale
        k = qkv[:, 1 * HIDDEN:2 * HIDDEN]
        v = qkv[:, 2 * HIDDEN:3 * HIDDEN]

        # --- attention: all batch x head blocks in one kernel invocation ---
        ctx_heads = []
        for hd in range(HEADS):
            lo, hi = hd * HEAD_DIM, (hd + 1) * HEAD_DIM
            qh = q[:, lo:hi]                                         # (B*S, Dh)
            kh = k[:, lo:hi]
            vh = v[:, lo:hi]
            # q . k^T without an explicit transpose (contract on dim 1 of both).
            s = jax.lax.dot_general(
                qh, kh, (((1,), (1,)), ((), ())),
                preferred_element_type=jnp.float32)                  # (B*S, B*S)
            s = s + bias                                  # batch-block-diag + key mask
            s = s - jnp.max(s, axis=-1, keepdims=True)
            p = jnp.exp(s)
            p = p * pl.reciprocal(jnp.sum(p, axis=-1, keepdims=True), approx=True)
            ctx_heads.append(jnp.dot(p, vh, preferred_element_type=jnp.float32))
        ctx = jnp.concatenate(ctx_heads, axis=-1)                    # (B*S, H)

        # --- attention output projection + residual + LayerNorm ---
        attn_out = jnp.dot(ctx, o_w_ref[l], preferred_element_type=jnp.float32)
        attn_out = attn_out + o_b_ref[l]
        h = layernorm(attn_out + h, ln1_g_ref[l], ln1_b_ref[l])

        # --- FFN (GELU) + residual + LayerNorm ---
        inter = jnp.dot(h, i_w_ref[l], preferred_element_type=jnp.float32)
        inter = inter + i_b_ref[l]
        # TODO(synk): HF bert-base uses exact (erf) GELU; tanh approximation used here.
        inter = jax.nn.gelu(inter, approximate=True)
        ffn = jnp.dot(inter, f_w_ref[l], preferred_element_type=jnp.float32)
        ffn = ffn + f_b_ref[l]
        h = layernorm(ffn + h, ln2_g_ref[l], ln2_b_ref[l])

    # --- pooler: tanh(Linear([CLS])) ; dropout(0.3) is identity at inference ---
    cls_rows = jnp.concatenate(
        [h[b * SEQ:b * SEQ + 1, :] for b in range(BATCH)], axis=0)   # (B, H)
    pooled = jnp.tanh(
        jnp.dot(cls_rows, pool_w_ref[...], preferred_element_type=jnp.float32)
        + pool_b_ref[...])

    # --- final classifier Linear(hidden -> 1) ---
    logits = jnp.dot(pooled, cls_w_ref[...], preferred_element_type=jnp.float32)
    logits = logits + cls_b_ref[...]
    out_ref[...] = logits.astype(out_ref.dtype)


# ---------------------------------------------------------------------------
# Parameter init (deterministic, synthetic — no checkpoint loading)
# ---------------------------------------------------------------------------
def init_params(key):
    def nrm(k, shape):
        return 0.02 * jax.random.normal(k, shape, jnp.float32)

    keys = iter(jax.random.split(key, 5 + 6 * LAYERS))
    p = {
        "word_emb": nrm(next(keys), (VOCAB, HIDDEN)),
        "pos_emb": nrm(next(keys), (MAX_POS, HIDDEN)),
        "type_emb": nrm(next(keys), (2, HIDDEN)),
        "emb_ln_g": jnp.ones((1, HIDDEN), jnp.float32),
        "emb_ln_b": jnp.zeros((1, HIDDEN), jnp.float32),
        "pool_w": nrm(next(keys), (HIDDEN, HIDDEN)),
        "pool_b": jnp.zeros((1, HIDDEN), jnp.float32),
        "cls_w": nrm(next(keys), (HIDDEN, 1)),
        "cls_b": jnp.zeros((1, 1), jnp.float32),
    }
    qkv_w, o_w, i_w, f_w = [], [], [], []
    for _ in range(LAYERS):
        q_w = nrm(next(keys), (HIDDEN, HIDDEN))
        k_w = nrm(next(keys), (HIDDEN, HIDDEN))
        v_w = nrm(next(keys), (HIDDEN, HIDDEN))
        qkv_w.append(jnp.concatenate([q_w, k_w, v_w], axis=1))   # merged QKV weight
        o_w.append(nrm(next(keys), (HIDDEN, HIDDEN)))
        i_w.append(nrm(next(keys), (HIDDEN, INTERMEDIATE)))
        f_w.append(nrm(next(keys), (INTERMEDIATE, HIDDEN)))
    p.update({
        "qkv_w": jnp.stack(qkv_w),
        "qkv_b": jnp.zeros((LAYERS, 1, 3 * HIDDEN), jnp.float32),
        "o_w": jnp.stack(o_w),
        "o_b": jnp.zeros((LAYERS, 1, HIDDEN), jnp.float32),
        "ln1_g": jnp.ones((LAYERS, 1, HIDDEN), jnp.float32),
        "ln1_b": jnp.zeros((LAYERS, 1, HIDDEN), jnp.float32),
        "i_w": jnp.stack(i_w),
        "i_b": jnp.zeros((LAYERS, 1, INTERMEDIATE), jnp.float32),
        "f_w": jnp.stack(f_w),
        "f_b": jnp.zeros((LAYERS, 1, HIDDEN), jnp.float32),
        "ln2_g": jnp.ones((LAYERS, 1, HIDDEN), jnp.float32),
        "ln2_b": jnp.zeros((LAYERS, 1, HIDDEN), jnp.float32),
    })
    return p


# ---------------------------------------------------------------------------
# Forward pass: embedding gather + mask bias in plain JAX, rest in ONE kernel
# ---------------------------------------------------------------------------
@jax.jit
def grade_predictor_forward(params, input_ids, attention_mask):
    B, S = input_ids.shape
    # Embedding gather is glue (table lookup) kept in plain JAX.
    word = params["word_emb"][input_ids]                           # (B, S, H)
    pos = params["pos_emb"][jnp.arange(S)][None, :, :]             # (1, S, H)
    typ = params["type_emb"][0][None, None, :]                     # (1, 1, H)
    emb = (word + pos + typ).reshape(B * S, HIDDEN)                # (B*S, H)

    # Additive attention bias, precomputed once: BERT key mask + a block-diagonal
    # term so all batches can share one (B*S, B*S) score matrix inside the kernel.
    key_bias = (1.0 - attention_mask.astype(jnp.float32)) * -10000.0   # (B, S)
    batch_ids = jnp.repeat(jnp.arange(B), S)                            # (B*S,)
    same_batch = batch_ids[:, None] == batch_ids[None, :]
    bias = jnp.where(same_batch, key_bias.reshape(1, B * S), -10000.0)  # (B*S, B*S)

    return pl.pallas_call(
        _bert_forward_kernel,
        out_shape=jax.ShapeDtypeStruct((B, 1), jnp.float32),
    )(
        emb, bias,
        params["emb_ln_g"], params["emb_ln_b"],
        params["qkv_w"], params["qkv_b"],
        params["o_w"], params["o_b"],
        params["ln1_g"], params["ln1_b"],
        params["i_w"], params["i_b"],
        params["f_w"], params["f_b"],
        params["ln2_g"], params["ln2_b"],
        params["pool_w"], params["pool_b"],
        params["cls_w"], params["cls_b"],
    )


if __name__ == "__main__":
    key = jax.random.PRNGKey(0)
    k_params, k_ids = jax.random.split(key)

    params = init_params(k_params)
    input_ids = jax.random.randint(k_ids, (BATCH, SEQ), 0, VOCAB, dtype=jnp.int32)
    attention_mask = jnp.array(
        [[1, 1, 1, 1, 1, 1, 1, 1],
         [1, 1, 1, 1, 1, 1, 0, 0]], dtype=jnp.int32)

    out = grade_predictor_forward(params, input_ids, attention_mask)
    out = jax.block_until_ready(out)
    assert out.shape == (BATCH, 1) and out.dtype == jnp.float32
    print("KERNEL_OK")
</pallas_src>

<mosaic_0001>
module attributes {stable_mosaic.version = 11 : i64} {
  func.func @_bert_forward_kernel(%arg0: memref<16x32xf32, #tpu.memory_space<vmem>>, %arg1: memref<16x16xf32, #tpu.memory_space<vmem>>, %arg2: memref<1x32xf32, #tpu.memory_space<vmem>>, %arg3: memref<1x32xf32, #tpu.memory_space<vmem>>, %arg4: memref<2x32x96xf32, #tpu.memory_space<vmem>>, %arg5: memref<2x1x96xf32, #tpu.memory_space<vmem>>, %arg6: memref<2x32x32xf32, #tpu.memory_space<vmem>>, %arg7: memref<2x1x32xf32, #tpu.memory_space<vmem>>, %arg8: memref<2x1x32xf32, #tpu.memory_space<vmem>>, %arg9: memref<2x1x32xf32, #tpu.memory_space<vmem>>, %arg10: memref<2x32x64xf32, #tpu.memory_space<vmem>>, %arg11: memref<2x1x64xf32, #tpu.memory_space<vmem>>, %arg12: memref<2x64x32xf32, #tpu.memory_space<vmem>>, %arg13: memref<2x1x32xf32, #tpu.memory_space<vmem>>, %arg14: memref<2x1x32xf32, #tpu.memory_space<vmem>>, %arg15: memref<2x1x32xf32, #tpu.memory_space<vmem>>, %arg16: memref<32x32xf32, #tpu.memory_space<vmem>>, %arg17: memref<1x32xf32, #tpu.memory_space<vmem>>, %arg18: memref<32x1xf32, #tpu.memory_space<vmem>>, %arg19: memref<1x1xf32, #tpu.memory_space<vmem>>, %arg20: memref<2x1xf32, #tpu.memory_space<vmem>>) attributes {dimension_semantics = [], scalar_prefetch = 0 : i64, scratch_operands = 0 : i64, tpu.core_type = #tpu.core_type<tc>} {
    %c0 = arith.constant 0 : index
    %c0_0 = arith.constant 0 : index
    %0 = vector.load %arg0[%c0, %c0_0] : memref<16x32xf32, #tpu.memory_space<vmem>>, vector<16x32xf32>
    %c0_1 = arith.constant 0 : index
    %c0_2 = arith.constant 0 : index
    %1 = vector.load %arg2[%c0_1, %c0_2] : memref<1x32xf32, #tpu.memory_space<vmem>>, vector<1x32xf32>
    %c0_3 = arith.constant 0 : index
    %c0_4 = arith.constant 0 : index
    %2 = vector.load %arg3[%c0_3, %c0_4] : memref<1x32xf32, #tpu.memory_space<vmem>>, vector<1x32xf32>
    %cst = arith.constant dense<0.000000e+00> : vector<16xf32>
    %3 = vector.multi_reduction <add>, %0, %cst [1] : vector<16x32xf32> to vector<16xf32>
    %4 = vector.shape_cast %3 : vector<16xf32> to vector<16x1xf32>
    %cst_5 = arith.constant 3.200000e+01 : f32
    %5 = vector.broadcast %cst_5 : f32 to vector<16x1xf32>
    %6 = arith.divf %4, %5 : vector<16x1xf32>
    %7 = vector.broadcast %6 : vector<16x1xf32> to vector<16x32xf32>
    %8 = arith.subf %0, %7 : vector<16x32xf32>
    %9 = arith.mulf %8, %8 : vector<16x32xf32>
    %cst_6 = arith.constant dense<0.000000e+00> : vector<16xf32>
    %10 = vector.multi_reduction <add>, %9, %cst_6 [1] : vector<16x32xf32> to vector<16xf32>
    %11 = vector.shape_cast %10 : vector<16xf32> to vector<16x1xf32>
    %cst_7 = arith.constant 3.200000e+01 : f32
    %12 = vector.broadcast %cst_7 : f32 to vector<16x1xf32>
    %13 = arith.divf %11, %12 : vector<16x1xf32>
    %cst_8 = arith.constant 9.99999996E-13 : f32
    %14 = vector.broadcast %cst_8 : f32 to vector<16x1xf32>
    %15 = arith.addf %13, %14 : vector<16x1xf32>
    %16 = math.rsqrt %15 : vector<16x1xf32>
    %17 = vector.broadcast %16 : vector<16x1xf32> to vector<16x32xf32>
    %18 = arith.mulf %8, %17 : vector<16x32xf32>
    %19 = vector.broadcast %1 : vector<1x32xf32> to vector<16x32xf32>
    %20 = arith.mulf %18, %19 : vector<16x32xf32>
    %21 = vector.broadcast %2 : vector<1x32xf32> to vector<16x32xf32>
    %22 = arith.addf %20, %21 : vector<16x32xf32>
    %c0_9 = arith.constant 0 : index
    %c0_10 = arith.constant 0 : index
    %23 = vector.load %arg1[%c0_9, %c0_10] : memref<16x16xf32, #tpu.memory_space<vmem>>, vector<16x16xf32>
    %c0_11 = arith.constant 0 : index
    %c0_12 = arith.constant 0 : index
    %c0_13 = arith.constant 0 : index
    %24 = vector.load %arg4[%c0_11, %c0_12, %c0_13] : memref<2x32x96xf32, #tpu.memory_space<vmem>>, vector<1x32x96xf32>
    %25 = vector.shape_cast %24 : vector<1x32x96xf32> to vector<32x96xf32>
    %cst_14 = arith.constant dense<0.000000e+00> : vector<16x96xf32>
    %26 = tpu.matmul %22, %25, %cst_14 {dimension_numbers = #tpu.dot_dimension_numbers<[1], [0], [0], [1], [0, 0, 1, 1], [], []>} : vector<16x32xf32>, vector<32x96xf32>, vector<16x96xf32> -> vector<16x96xf32>
    %c0_15 = arith.constant 0 : index
    %c0_16 = arith.constant 0 : index
    %c0_17 = arith.constant 0 : index
    %27 = vector.load %arg5[%c0_15, %c0_16, %c0_17] : memref<2x1x96xf32, #tpu.memory_space<vmem>>, vector<1x1x96xf32>
    %28 = vector.shape_cast %27 : vector<1x1x96xf32> to vector<1x96xf32>
    %29 = vector.broadcast %28 : vector<1x96xf32> to vector<16x96xf32>
    %30 = arith.addf %26, %29 : vector<16x96xf32>
    %31 = vector.extract_strided_slice %30 {offsets = [0, 0], sizes = [16, 32], strides = [1, 1]} : vector<16x96xf32> to vector<16x32xf32>
    %cst_18 = arith.constant 2.500000e-01 : f32
    %32 = vector.broadcast %cst_18 : f32 to vector<16x32xf32>
    %33 = arith.mulf %31, %32 : vector<16x32xf32>
    %34 = vector.extract_strided_slice %30 {offsets = [0, 32], sizes = [16, 32], strides = [1, 1]} : vector<16x96xf32> to vector<16x32xf32>
    %35 = vector.extract_strided_slice %30 {offsets = [0, 64], sizes = [16, 32], strides = [1, 1]} : vector<16x96xf32> to vector<16x32xf32>
    %36 = vector.extract_strided_slice %33 {offsets = [0, 0], sizes = [16, 16], strides = [1, 1]} : vector<16x32xf32> to vector<16x16xf32>
    %37 = vector.extract_strided_slice %34 {offsets = [0, 0], sizes = [16, 16], strides = [1, 1]} : vector<16x32xf32> to vector<16x16xf32>
    %38 = vector.extract_strided_slice %35 {offsets = [0, 0], sizes = [16, 16], strides = [1, 1]} : vector<16x32xf32> to vector<16x16xf32>
    %cst_19 = arith.constant dense<0.000000e+00> : vector<16x16xf32>
    %39 = tpu.matmul %36, %37, %cst_19 {dimension_numbers = #tpu.dot_dimension_numbers<[1], [1], [0], [0], [0, 0, 1, 0], [], []>} : vector<16x16xf32>, vector<16x16xf32>, vector<16x16xf32> -> vector<16x16xf32>
    %40 = arith.addf %39, %23 : vector<16x16xf32>
    %cst_20 = arith.constant dense<0xFF800000> : vector<16xf32>
    %41 = vector.multi_reduction <maximumf>, %40, %cst_20 [1] : vector<16x16xf32> to vector<16xf32>
    %42 = vector.shape_cast %41 : vector<16xf32> to vector<16x1xf32>
    %43 = vector.broadcast %42 : vector<16x1xf32> to vector<16x16xf32>
    %44 = arith.subf %40, %43 : vector<16x16xf32>
    %45 = math.exp %44 : vector<16x16xf32>
    %cst_21 = arith.constant dense<0.000000e+00> : vector<16xf32>
    %46 = vector.multi_reduction <add>, %45, %cst_21 [1] : vector<16x16xf32> to vector<16xf32>
    %47 = vector.shape_cast %46 : vector<16xf32> to vector<16x1xf32>
    %48 = tpu.reciprocal %47 {approx = true} : vector<16x1xf32> -> vector<16x1xf32>
    %49 = vector.broadcast %48 : vector<16x1xf32> to vector<16x16xf32>
    %50 = arith.mulf %45, %49 : vector<16x16xf32>
    %cst_22 = arith.constant dense<0.000000e+00> : vector<16x16xf32>
    %51 = tpu.matmul %50, %38, %cst_22 {dimension_numbers = #tpu.dot_dimension_numbers<[1], [0], [0], [1], [0, 0, 1, 1], [], []>} : vector<16x16xf32>, vector<16x16xf32>, vector<16x16xf32> -> vector<16x16xf32>
    %52 = vector.extract_strided_slice %33 {offsets = [0, 16], sizes = [16, 16], strides = [1, 1]} : vector<16x32xf32> to vector<16x16xf32>
    %53 = vector.extract_strided_slice %34 {offsets = [0, 16], sizes = [16, 16], strides = [1, 1]} : vector<16x32xf32> to vector<16x16xf32>
    %54 = vector.extract_strided_slice %35 {offsets = [0, 16], sizes = [16, 16], strides = [1, 1]} : vector<16x32xf32> to vector<16x16xf32>
    %cst_23 = arith.constant dense<0.000000e+00> : vector<16x16xf32>
    %55 = tpu.matmul %52, %53, %cst_23 {dimension_numbers = #tpu.dot_dimension_numbers<[1], [1], [0], [0], [0, 0, 1, 0], [], []>} : vector<16x16xf32>, vector<16x16xf32>, vector<16x16xf32> -> vector<16x16xf32>
    %56 = arith.addf %55, %23 : vector<16x16xf32>
    %cst_24 = arith.constant dense<0xFF800000> : vector<16xf32>
    %57 = vector.multi_reduction <maximumf>, %56, %cst_24 [1] : vector<16x16xf32> to vector<16xf32>
    %58 = vector.shape_cast %57 : vector<16xf32> to vector<16x1xf32>
    %59 = vector.broadcast %58 : vector<16x1xf32> to vector<16x16xf32>
    %60 = arith.subf %56, %59 : vector<16x16xf32>
    %61 = math.exp %60 : vector<16x16xf32>
    %cst_25 = arith.constant dense<0.000000e+00> : vector<16xf32>
    %62 = vector.multi_reduction <add>, %61, %cst_25 [1] : vector<16x16xf32> to vector<16xf32>
    %63 = vector.shape_cast %62 : vector<16xf32> to vector<16x1xf32>
    %64 = tpu.reciprocal %63 {approx = true} : vector<16x1xf32> -> vector<16x1xf32>
    %65 = vector.broadcast %64 : vector<16x1xf32> to vector<16x16xf32>
    %66 = arith.mulf %61, %65 : vector<16x16xf32>
    %cst_26 = arith.constant dense<0.000000e+00> : vector<16x16xf32>
    %67 = tpu.matmul %66, %54, %cst_26 {dimension_numbers = #tpu.dot_dimension_numbers<[1], [0], [0], [1], [0, 0, 1, 1], [], []>} : vector<16x16xf32>, vector<16x16xf32>, vector<16x16xf32> -> vector<16x16xf32>
    %68 = tpu.concatenate %51, %67 in 1 : vector<16x16xf32>, vector<16x16xf32> -> vector<16x32xf32>
    %c0_27 = arith.constant 0 : index
    %c0_28 = arith.constant 0 : index
    %c0_29 = arith.constant 0 : index
    %69 = vector.load %arg6[%c0_27, %c0_28, %c0_29] : memref<2x32x32xf32, #tpu.memory_space<vmem>>, vector<1x32x32xf32>
    %70 = vector.shape_cast %69 : vector<1x32x32xf32> to vector<32x32xf32>
    %cst_30 = arith.constant dense<0.000000e+00> : vector<16x32xf32>
    %71 = tpu.matmul %68, %70, %cst_30 {dimension_numbers = #tpu.dot_dimension_numbers<[1], [0], [0], [1], [0, 0, 1, 1], [], []>} : vector<16x32xf32>, vector<32x32xf32>, vector<16x32xf32> -> vector<16x32xf32>
    %c0_31 = arith.constant 0 : index
    %c0_32 = arith.constant 0 : index
    %c0_33 = arith.constant 0 : index
    %72 = vector.load %arg7[%c0_31, %c0_32, %c0_33] : memref<2x1x32xf32, #tpu.memory_space<vmem>>, vector<1x1x32xf32>
    %73 = vector.shape_cast %72 : vector<1x1x32xf32> to vector<1x32xf32>
    %74 = vector.broadcast %73 : vector<1x32xf32> to vector<16x32xf32>
    %75 = arith.addf %71, %74 : vector<16x32xf32>
    %76 = arith.addf %75, %22 : vector<16x32xf32>
    %c0_34 = arith.constant 0 : index
    %c0_35 = arith.constant 0 : index
    %c0_36 = arith.constant 0 : index
    %77 = vector.load %arg8[%c0_34, %c0_35, %c0_36] : memref<2x1x32xf32, #tpu.memory_space<vmem>>, vector<1x1x32xf32>
    %78 = vector.shape_cast %77 : vector<1x1x32xf32> to vector<1x32xf32>
    %c0_37 = arith.constant 0 : index
    %c0_38 = arith.constant 0 : index
    %c0_39 = arith.constant 0 : index
    %79 = vector.load %arg9[%c0_37, %c0_38, %c0_39] : memref<2x1x32xf32, #tpu.memory_space<vmem>>, vector<1x1x32xf32>
    %80 = vector.shape_cast %79 : vector<1x1x32xf32> to vector<1x32xf32>
    %cst_40 = arith.constant dense<0.000000e+00> : vector<16xf32>
    %81 = vector.multi_reduction <add>, %76, %cst_40 [1] : vector<16x32xf32> to vector<16xf32>
    %82 = vector.shape_cast %81 : vector<16xf32> to vector<16x1xf32>
    %cst_41 = arith.constant 3.200000e+01 : f32
    %83 = vector.broadcast %cst_41 : f32 to vector<16x1xf32>
    %84 = arith.divf %82, %83 : vector<16x1xf32>
    %85 = vector.broadcast %84 : vector<16x1xf32> to vector<16x32xf32>
    %86 = arith.subf %76, %85 : vector<16x32xf32>
    %87 = arith.mulf %86, %86 : vector<16x32xf32>
    %cst_42 = arith.constant dense<0.000000e+00> : vector<16xf32>
    %88 = vector.multi_reduction <add>, %87, %cst_42 [1] : vector<16x32xf32> to vector<16xf32>
    %89 = vector.shape_cast %88 : vector<16xf32> to vector<16x1xf32>
    %cst_43 = arith.constant 3.200000e+01 : f32
    %90 = vector.broadcast %cst_43 : f32 to vector<16x1xf32>
    %91 = arith.divf %89, %90 : vector<16x1xf32>
    %cst_44 = arith.constant 9.99999996E-13 : f32
    %92 = vector.broadcast %cst_44 : f32 to vector<16x1xf32>
    %93 = arith.addf %91, %92 : vector<16x1xf32>
    %94 = math.rsqrt %93 : vector<16x1xf32>
    %95 = vector.broadcast %94 : vector<16x1xf32> to vector<16x32xf32>
    %96 = arith.mulf %86, %95 : vector<16x32xf32>
    %97 = vector.broadcast %78 : vector<1x32xf32> to vector<16x32xf32>
    %98 = arith.mulf %96, %97 : vector<16x32xf32>
    %99 = vector.broadcast %80 : vector<1x32xf32> to vector<16x32xf32>
    %100 = arith.addf %98, %99 : vector<16x32xf32>
    %c0_45 = arith.constant 0 : index
    %c0_46 = arith.constant 0 : index
    %c0_47 = arith.constant 0 : index
    %101 = vector.load %arg10[%c0_45, %c0_46, %c0_47] : memref<2x32x64xf32, #tpu.memory_space<vmem>>, vector<1x32x64xf32>
    %102 = vector.shape_cast %101 : vector<1x32x64xf32> to vector<32x64xf32>
    %cst_48 = arith.constant dense<0.000000e+00> : vector<16x64xf32>
    %103 = tpu.matmul %100, %102, %cst_48 {dimension_numbers = #tpu.dot_dimension_numbers<[1], [0], [0], [1], [0, 0, 1, 1], [], []>} : vector<16x32xf32>, vector<32x64xf32>, vector<16x64xf32> -> vector<16x64xf32>
    %c0_49 = arith.constant 0 : index
    %c0_50 = arith.constant 0 : index
    %c0_51 = arith.constant 0 : index
    %104 = vector.load %arg11[%c0_49, %c0_50, %c0_51] : memref<2x1x64xf32, #tpu.memory_space<vmem>>, vector<1x1x64xf32>
    %105 = vector.shape_cast %104 : vector<1x1x64xf32> to vector<1x64xf32>
    %106 = vector.broadcast %105 : vector<1x64xf32> to vector<16x64xf32>
    %107 = arith.addf %103, %106 : vector<16x64xf32>
    %108 = arith.mulf %107, %107 : vector<16x64xf32>
    %109 = arith.mulf %107, %108 : vector<16x64xf32>
    %cst_52 = arith.constant 4.471500e-02 : f32
    %110 = vector.broadcast %cst_52 : f32 to vector<16x64xf32>
    %111 = arith.mulf %110, %109 : vector<16x64xf32>
    %112 = arith.addf %107, %111 : vector<16x64xf32>
    %cst_53 = arith.constant 0.797884583 : f32
    %113 = vector.broadcast %cst_53 : f32 to vector<16x64xf32>
    %114 = arith.mulf %113, %112 : vector<16x64xf32>
    %115 = math.tanh %114 : vector<16x64xf32>
    %cst_54 = arith.constant 1.000000e+00 : f32
    %116 = vector.broadcast %cst_54 : f32 to vector<16x64xf32>
    %117 = arith.addf %116, %115 : vector<16x64xf32>
    %cst_55 = arith.constant 5.000000e-01 : f32
    %118 = vector.broadcast %cst_55 : f32 to vector<16x64xf32>
    %119 = arith.mulf %118, %117 : vector<16x64xf32>
    %120 = arith.mulf %107, %119 : vector<16x64xf32>
    %c0_56 = arith.constant 0 : index
    %c0_57 = arith.constant 0 : index
    %c0_58 = arith.constant 0 : index
    %121 = vector.load %arg12[%c0_56, %c0_57, %c0_58] : memref<2x64x32xf32, #tpu.memory_space<vmem>>, vector<1x64x32xf32>
    %122 = vector.shape_cast %121 : vector<1x64x32xf32> to vector<64x32xf32>
    %cst_59 = arith.constant dense<0.000000e+00> : vector<16x32xf32>
    %123 = tpu.matmul %120, %122, %cst_59 {dimension_numbers = #tpu.dot_dimension_numbers<[1], [0], [0], [1], [0, 0, 1, 1], [], []>} : vector<16x64xf32>, vector<64x32xf32>, vector<16x32xf32> -> vector<16x32xf32>
    %c0_60 = arith.constant 0 : index
    %c0_61 = arith.constant 0 : index
    %c0_62 = arith.constant 0 : index
    %124 = vector.load %arg13[%c0_60, %c0_61, %c0_62] : memref<2x1x32xf32, #tpu.memory_space<vmem>>, vector<1x1x32xf32>
    %125 = vector.shape_cast %124 : vector<1x1x32xf32> to vector<1x32xf32>
    %126 = vector.broadcast %125 : vector<1x32xf32> to vector<16x32xf32>
    %127 = arith.addf %123, %126 : vector<16x32xf32>
    %128 = arith.addf %127, %100 : vector<16x32xf32>
    %c0_63 = arith.constant 0 : index
    %c0_64 = arith.constant 0 : index
    %c0_65 = arith.constant 0 : index
    %129 = vector.load %arg14[%c0_63, %c0_64, %c0_65] : memref<2x1x32xf32, #tpu.memory_space<vmem>>, vector<1x1x32xf32>
    %130 = vector.shape_cast %129 : vector<1x1x32xf32> to vector<1x32xf32>
    %c0_66 = arith.constant 0 : index
    %c0_67 = arith.constant 0 : index
    %c0_68 = arith.constant 0 : index
    %131 = vector.load %arg15[%c0_66, %c0_67, %c0_68] : memref<2x1x32xf32, #tpu.memory_space<vmem>>, vector<1x1x32xf32>
    %132 = vector.shape_cast %131 : vector<1x1x32xf32> to vector<1x32xf32>
    %cst_69 = arith.constant dense<0.000000e+00> : vector<16xf32>
    %133 = vector.multi_reduction <add>, %128, %cst_69 [1] : vector<16x32xf32> to vector<16xf32>
    %134 = vector.shape_cast %133 : vector<16xf32> to vector<16x1xf32>
    %cst_70 = arith.constant 3.200000e+01 : f32
    %135 = vector.broadcast %cst_70 : f32 to vector<16x1xf32>
    %136 = arith.divf %134, %135 : vector<16x1xf32>
    %137 = vector.broadcast %136 : vector<16x1xf32> to vector<16x32xf32>
    %138 = arith.subf %128, %137 : vector<16x32xf32>
    %139 = arith.mulf %138, %138 : vector<16x32xf32>
    %cst_71 = arith.constant dense<0.000000e+00> : vector<16xf32>
    %140 = vector.multi_reduction <add>, %139, %cst_71 [1] : vector<16x32xf32> to vector<16xf32>
    %141 = vector.shape_cast %140 : vector<16xf32> to vector<16x1xf32>
    %cst_72 = arith.constant 3.200000e+01 : f32
    %142 = vector.broadcast %cst_72 : f32 to vector<16x1xf32>
    %143 = arith.divf %141, %142 : vector<16x1xf32>
    %cst_73 = arith.constant 9.99999996E-13 : f32
    %144 = vector.broadcast %cst_73 : f32 to vector<16x1xf32>
    %145 = arith.addf %143, %144 : vector<16x1xf32>
    %146 = math.rsqrt %145 : vector<16x1xf32>
    %147 = vector.broadcast %146 : vector<16x1xf32> to vector<16x32xf32>
    %148 = arith.mulf %138, %147 : vector<16x32xf32>
    %149 = vector.broadcast %130 : vector<1x32xf32> to vector<16x32xf32>
    %150 = arith.mulf %148, %149 : vector<16x32xf32>
    %151 = vector.broadcast %132 : vector<1x32xf32> to vector<16x32xf32>
    %152 = arith.addf %150, %151 : vector<16x32xf32>
    %c1 = arith.constant 1 : index
    %c0_74 = arith.constant 0 : index
    %c0_75 = arith.constant 0 : index
    %153 = vector.load %arg4[%c1, %c0_74, %c0_75] : memref<2x32x96xf32, #tpu.memory_space<vmem>>, vector<1x32x96xf32>
    %154 = vector.shape_cast %153 : vector<1x32x96xf32> to vector<32x96xf32>
    %cst_76 = arith.constant dense<0.000000e+00> : vector<16x96xf32>
    %155 = tpu.matmul %152, %154, %cst_76 {dimension_numbers = #tpu.dot_dimension_numbers<[1], [0], [0], [1], [0, 0, 1, 1], [], []>} : vector<16x32xf32>, vector<32x96xf32>, vector<16x96xf32> -> vector<16x96xf32>
    %c1_77 = arith.constant 1 : index
    %c0_78 = arith.constant 0 : index
    %c0_79 = arith.constant 0 : index
    %156 = vector.load %arg5[%c1_77, %c0_78, %c0_79] : memref<2x1x96xf32, #tpu.memory_space<vmem>>, vector<1x1x96xf32>
    %157 = vector.shape_cast %156 : vector<1x1x96xf32> to vector<1x96xf32>
    %158 = vector.broadcast %157 : vector<1x96xf32> to vector<16x96xf32>
    %159 = arith.addf %155, %158 : vector<16x96xf32>
    %160 = vector.extract_strided_slice %159 {offsets = [0, 0], sizes = [16, 32], strides = [1, 1]} : vector<16x96xf32> to vector<16x32xf32>
    %cst_80 = arith.constant 2.500000e-01 : f32
    %161 = vector.broadcast %cst_80 : f32 to vector<16x32xf32>
    %162 = arith.mulf %160, %161 : vector<16x32xf32>
    %163 = vector.extract_strided_slice %159 {offsets = [0, 32], sizes = [16, 32], strides = [1, 1]} : vector<16x96xf32> to vector<16x32xf32>
    %164 = vector.extract_strided_slice %159 {offsets = [0, 64], sizes = [16, 32], strides = [1, 1]} : vector<16x96xf32> to vector<16x32xf32>
    %165 = vector.extract_strided_slice %162 {offsets = [0, 0], sizes = [16, 16], strides = [1, 1]} : vector<16x32xf32> to vector<16x16xf32>
    %166 = vector.extract_strided_slice %163 {offsets = [0, 0], sizes = [16, 16], strides = [1, 1]} : vector<16x32xf32> to vector<16x16xf32>
    %167 = vector.extract_strided_slice %164 {offsets = [0, 0], sizes = [16, 16], strides = [1, 1]} : vector<16x32xf32> to vector<16x16xf32>
    %cst_81 = arith.constant dense<0.000000e+00> : vector<16x16xf32>
    %168 = tpu.matmul %165, %166, %cst_81 {dimension_numbers = #tpu.dot_dimension_numbers<[1], [1], [0], [0], [0, 0, 1, 0], [], []>} : vector<16x16xf32>, vector<16x16xf32>, vector<16x16xf32> -> vector<16x16xf32>
    %169 = arith.addf %168, %23 : vector<16x16xf32>
    %cst_82 = arith.constant dense<0xFF800000> : vector<16xf32>
    %170 = vector.multi_reduction <maximumf>, %169, %cst_82 [1] : vector<16x16xf32> to vector<16xf32>
    %171 = vector.shape_cast %170 : vector<16xf32> to vector<16x1xf32>
    %172 = vector.broadcast %171 : vector<16x1xf32> to vector<16x16xf32>
    %173 = arith.subf %169, %172 : vector<16x16xf32>
    %174 = math.exp %173 : vector<16x16xf32>
    %cst_83 = arith.constant dense<0.000000e+00> : vector<16xf32>
    %175 = vector.multi_reduction <add>, %174, %cst_83 [1] : vector<16x16xf32> to vector<16xf32>
    %176 = vector.shape_cast %175 : vector<16xf32> to vector<16x1xf32>
    %177 = tpu.reciprocal %176 {approx = true} : vector<16x1xf32> -> vector<16x1xf32>
    %178 = vector.broadcast %177 : vector<16x1xf32> to vector<16x16xf32>
    %179 = arith.mulf %174, %178 : vector<16x16xf32>
    %cst_84 = arith.constant dense<0.000000e+00> : vector<16x16xf32>
    %180 = tpu.matmul %179, %167, %cst_84 {dimension_numbers = #tpu.dot_dimension_numbers<[1], [0], [0], [1], [0, 0, 1, 1], [], []>} : vector<16x16xf32>, vector<16x16xf32>, vector<16x16xf32> -> vector<16x16xf32>
    %181 = vector.extract_strided_slice %162 {offsets = [0, 16], sizes = [16, 16], strides = [1, 1]} : vector<16x32xf32> to vector<16x16xf32>
    %182 = vector.extract_strided_slice %163 {offsets = [0, 16], sizes = [16, 16], strides = [1, 1]} : vector<16x32xf32> to vector<16x16xf32>
    %183 = vector.extract_strided_slice %164 {offsets = [0, 16], sizes = [16, 16], strides = [1, 1]} : vector<16x32xf32> to vector<16x16xf32>
    %cst_85 = arith.constant dense<0.000000e+00> : vector<16x16xf32>
    %184 = tpu.matmul %181, %182, %cst_85 {dimension_numbers = #tpu.dot_dimension_numbers<[1], [1], [0], [0], [0, 0, 1, 0], [], []>} : vector<16x16xf32>, vector<16x16xf32>, vector<16x16xf32> -> vector<16x16xf32>
    %185 = arith.addf %184, %23 : vector<16x16xf32>
    %cst_86 = arith.constant dense<0xFF800000> : vector<16xf32>
    %186 = vector.multi_reduction <maximumf>, %185, %cst_86 [1] : vector<16x16xf32> to vector<16xf32>
    %187 = vector.shape_cast %186 : vector<16xf32> to vector<16x1xf32>
    %188 = vector.broadcast %187 : vector<16x1xf32> to vector<16x16xf32>
    %189 = arith.subf %185, %188 : vector<16x16xf32>
    %190 = math.exp %189 : vector<16x16xf32>
    %cst_87 = arith.constant dense<0.000000e+00> : vector<16xf32>
    %191 = vector.multi_reduction <add>, %190, %cst_87 [1] : vector<16x16xf32> to vector<16xf32>
    %192 = vector.shape_cast %191 : vector<16xf32> to vector<16x1xf32>
    %193 = tpu.reciprocal %192 {approx = true} : vector<16x1xf32> -> vector<16x1xf32>
    %194 = vector.broadcast %193 : vector<16x1xf32> to vector<16x16xf32>
    %195 = arith.mulf %190, %194 : vector<16x16xf32>
    %cst_88 = arith.constant dense<0.000000e+00> : vector<16x16xf32>
    %196 = tpu.matmul %195, %183, %cst_88 {dimension_numbers = #tpu.dot_dimension_numbers<[1], [0], [0], [1], [0, 0, 1, 1], [], []>} : vector<16x16xf32>, vector<16x16xf32>, vector<16x16xf32> -> vector<16x16xf32>
    %197 = tpu.concatenate %180, %196 in 1 : vector<16x16xf32>, vector<16x16xf32> -> vector<16x32xf32>
    %c1_89 = arith.constant 1 : index
    %c0_90 = arith.constant 0 : index
    %c0_91 = arith.constant 0 : index
    %198 = vector.load %arg6[%c1_89, %c0_90, %c0_91] : memref<2x32x32xf32, #tpu.memory_space<vmem>>, vector<1x32x32xf32>
    %199 = vector.shape_cast %198 : vector<1x32x32xf32> to vector<32x32xf32>
    %cst_92 = arith.constant dense<0.000000e+00> : vector<16x32xf32>
    %200 = tpu.matmul %197, %199, %cst_92 {dimension_numbers = #tpu.dot_dimension_numbers<[1], [0], [0], [1], [0, 0, 1, 1], [], []>} : vector<16x32xf32>, vector<32x32xf32>, vector<16x32xf32> -> vector<16x32xf32>
    %c1_93 = arith.constant 1 : index
    %c0_94 = arith.constant 0 : index
    %c0_95 = arith.constant 0 : index
    %201 = vector.load %arg7[%c1_93, %c0_94, %c0_95] : memref<2x1x32xf32, #tpu.memory_space<vmem>>, vector<1x1x32xf32>
    %202 = vector.shape_cast %201 : vector<1x1x32xf32> to vector<1x32xf32>
    %203 = vector.broadcast %202 : vector<1x32xf32> to vector<16x32xf32>
    %204 = arith.addf %200, %203 : vector<16x32xf32>
    %205 = arith.addf %204, %152 : vector<16x32xf32>
    %c1_96 = arith.constant 1 : index
    %c0_97 = arith.constant 0 : index
    %c0_98 = arith.constant 0 : index
    %206 = vector.load %arg8[%c1_96, %c0_97, %c0_98] : memref<2x1x32xf32, #tpu.memory_space<vmem>>, vector<1x1x32xf32>
    %207 = vector.shape_cast %206 : vector<1x1x32xf32> to vector<1x32xf32>
    %c1_99 = arith.constant 1 : index
    %c0_100 = arith.constant 0 : index
    %c0_101 = arith.constant 0 : index
    %208 = vector.load %arg9[%c1_99, %c0_100, %c0_101] : memref<2x1x32xf32, #tpu.memory_space<vmem>>, vector<1x1x32xf32>
    %209 = vector.shape_cast %208 : vector<1x1x32xf32> to vector<1x32xf32>
    %cst_102 = arith.constant dense<0.000000e+00> : vector<16xf32>
    %210 = vector.multi_reduction <add>, %205, %cst_102 [1] : vector<16x32xf32> to vector<16xf32>
    %211 = vector.shape_cast %210 : vector<16xf32> to vector<16x1xf32>
    %cst_103 = arith.constant 3.200000e+01 : f32
    %212 = vector.broadcast %cst_103 : f32 to vector<16x1xf32>
    %213 = arith.divf %211, %212 : vector<16x1xf32>
    %214 = vector.broadcast %213 : vector<16x1xf32> to vector<16x32xf32>
    %215 = arith.subf %205, %214 : vector<16x32xf32>
    %216 = arith.mulf %215, %215 : vector<16x32xf32>
    %cst_104 = arith.constant dense<0.000000e+00> : vector<16xf32>
    %217 = vector.multi_reduction <add>, %216, %cst_104 [1] : vector<16x32xf32> to vector<16xf32>
    %218 = vector.shape_cast %217 : vector<16xf32> to vector<16x1xf32>
    %cst_105 = arith.constant 3.200000e+01 : f32
    %219 = vector.broadcast %cst_105 : f32 to vector<16x1xf32>
    %220 = arith.divf %218, %219 : vector<16x1xf32>
    %cst_106 = arith.constant 9.99999996E-13 : f32
    %221 = vector.broadcast %cst_106 : f32 to vector<16x1xf32>
    %222 = arith.addf %220, %221 : vector<16x1xf32>
    %223 = math.rsqrt %222 : vector<16x1xf32>
    %224 = vector.broadcast %223 : vector<16x1xf32> to vector<16x32xf32>
    %225 = arith.mulf %215, %224 : vector<16x32xf32>
    %226 = vector.broadcast %207 : vector<1x32xf32> to vector<16x32xf32>
    %227 = arith.mulf %225, %226 : vector<16x32xf32>
    %228 = vector.broadcast %209 : vector<1x32xf32> to vector<16x32xf32>
    %229 = arith.addf %227, %228 : vector<16x32xf32>
    %c1_107 = arith.constant 1 : index
    %c0_108 = arith.constant 0 : index
    %c0_109 = arith.constant 0 : index
    %230 = vector.load %arg10[%c1_107, %c0_108, %c0_109] : memref<2x32x64xf32, #tpu.memory_space<vmem>>, vector<1x32x64xf32>
    %231 = vector.shape_cast %230 : vector<1x32x64xf32> to vector<32x64xf32>
    %cst_110 = arith.constant dense<0.000000e+00> : vector<16x64xf32>
    %232 = tpu.matmul %229, %231, %cst_110 {dimension_numbers = #tpu.dot_dimension_numbers<[1], [0], [0], [1], [0, 0, 1, 1], [], []>} : vector<16x32xf32>, vector<32x64xf32>, vector<16x64xf32> -> vector<16x64xf32>
    %c1_111 = arith.constant 1 : index
    %c0_112 = arith.constant 0 : index
    %c0_113 = arith.constant 0 : index
    %233 = vector.load %arg11[%c1_111, %c0_112, %c0_113] : memref<2x1x64xf32, #tpu.memory_space<vmem>>, vector<1x1x64xf32>
    %234 = vector.shape_cast %233 : vector<1x1x64xf32> to vector<1x64xf32>
    %235 = vector.broadcast %234 : vector<1x64xf32> to vector<16x64xf32>
    %236 = arith.addf %232, %235 : vector<16x64xf32>
    %237 = arith.mulf %236, %236 : vector<16x64xf32>
    %238 = arith.mulf %236, %237 : vector<16x64xf32>
    %cst_114 = arith.constant 4.471500e-02 : f32
    %239 = vector.broadcast %cst_114 : f32 to vector<16x64xf32>
    %240 = arith.mulf %239, %238 : vector<16x64xf32>
    %241 = arith.addf %236, %240 : vector<16x64xf32>
    %cst_115 = arith.constant 0.797884583 : f32
    %242 = vector.broadcast %cst_115 : f32 to vector<16x64xf32>
    %243 = arith.mulf %242, %241 : vector<16x64xf32>
    %244 = math.tanh %243 : vector<16x64xf32>
    %cst_116 = arith.constant 1.000000e+00 : f32
    %245 = vector.broadcast %cst_116 : f32 to vector<16x64xf32>
    %246 = arith.addf %245, %244 : vector<16x64xf32>
    %cst_117 = arith.constant 5.000000e-01 : f32
    %247 = vector.broadcast %cst_117 : f32 to vector<16x64xf32>
    %248 = arith.mulf %247, %246 : vector<16x64xf32>
    %249 = arith.mulf %236, %248 : vector<16x64xf32>
    %c1_118 = arith.constant 1 : index
    %c0_119 = arith.constant 0 : index
    %c0_120 = arith.constant 0 : index
    %250 = vector.load %arg12[%c1_118, %c0_119, %c0_120] : memref<2x64x32xf32, #tpu.memory_space<vmem>>, vector<1x64x32xf32>
    %251 = vector.shape_cast %250 : vector<1x64x32xf32> to vector<64x32xf32>
    %cst_121 = arith.constant dense<0.000000e+00> : vector<16x32xf32>
    %252 = tpu.matmul %249, %251, %cst_121 {dimension_numbers = #tpu.dot_dimension_numbers<[1], [0], [0], [1], [0, 0, 1, 1], [], []>} : vector<16x64xf32>, vector<64x32xf32>, vector<16x32xf32> -> vector<16x32xf32>
    %c1_122 = arith.constant 1 : index
    %c0_123 = arith.constant 0 : index
    %c0_124 = arith.constant 0 : index
    %253 = vector.load %arg13[%c1_122, %c0_123, %c0_124] : memref<2x1x32xf32, #tpu.memory_space<vmem>>, vector<1x1x32xf32>
    %254 = vector.shape_cast %253 : vector<1x1x32xf32> to vector<1x32xf32>
    %255 = vector.broadcast %254 : vector<1x32xf32> to vector<16x32xf32>
    %256 = arith.addf %252, %255 : vector<16x32xf32>
    %257 = arith.addf %256, %229 : vector<16x32xf32>
    %c1_125 = arith.constant 1 : index
    %c0_126 = arith.constant 0 : index
    %c0_127 = arith.constant 0 : index
    %258 = vector.load %arg14[%c1_125, %c0_126, %c0_127] : memref<2x1x32xf32, #tpu.memory_space<vmem>>, vector<1x1x32xf32>
    %259 = vector.shape_cast %258 : vector<1x1x32xf32> to vector<1x32xf32>
    %c1_128 = arith.constant 1 : index
    %c0_129 = arith.constant 0 : index
    %c0_130 = arith.constant 0 : index
    %260 = vector.load %arg15[%c1_128, %c0_129, %c0_130] : memref<2x1x32xf32, #tpu.memory_space<vmem>>, vector<1x1x32xf32>
    %261 = vector.shape_cast %260 : vector<1x1x32xf32> to vector<1x32xf32>
    %cst_131 = arith.constant dense<0.000000e+00> : vector<16xf32>
    %262 = vector.multi_reduction <add>, %257, %cst_131 [1] : vector<16x32xf32> to vector<16xf32>
    %263 = vector.shape_cast %262 : vector<16xf32> to vector<16x1xf32>
    %cst_132 = arith.constant 3.200000e+01 : f32
    %264 = vector.broadcast %cst_132 : f32 to vector<16x1xf32>
    %265 = arith.divf %263, %264 : vector<16x1xf32>
    %266 = vector.broadcast %265 : vector<16x1xf32> to vector<16x32xf32>
    %267 = arith.subf %257, %266 : vector<16x32xf32>
    %268 = arith.mulf %267, %267 : vector<16x32xf32>
    %cst_133 = arith.constant dense<0.000000e+00> : vector<16xf32>
    %269 = vector.multi_reduction <add>, %268, %cst_133 [1] : vector<16x32xf32> to vector<16xf32>
    %270 = vector.shape_cast %269 : vector<16xf32> to vector<16x1xf32>
    %cst_134 = arith.constant 3.200000e+01 : f32
    %271 = vector.broadcast %cst_134 : f32 to vector<16x1xf32>
    %272 = arith.divf %270, %271 : vector<16x1xf32>
    %cst_135 = arith.constant 9.99999996E-13 : f32
    %273 = vector.broadcast %cst_135 : f32 to vector<16x1xf32>
    %274 = arith.addf %272, %273 : vector<16x1xf32>
    %275 = math.rsqrt %274 : vector<16x1xf32>
    %276 = vector.broadcast %275 : vector<16x1xf32> to vector<16x32xf32>
    %277 = arith.mulf %267, %276 : vector<16x32xf32>
    %278 = vector.broadcast %259 : vector<1x32xf32> to vector<16x32xf32>
    %279 = arith.mulf %277, %278 : vector<16x32xf32>
    %280 = vector.broadcast %261 : vector<1x32xf32> to vector<16x32xf32>
    %281 = arith.addf %279, %280 : vector<16x32xf32>
    %282 = vector.extract_strided_slice %281 {offsets = [0, 0], sizes = [1, 32], strides = [1, 1]} : vector<16x32xf32> to vector<1x32xf32>
    %283 = vector.extract_strided_slice %281 {offsets = [8, 0], sizes = [1, 32], strides = [1, 1]} : vector<16x32xf32> to vector<1x32xf32>
    %284 = tpu.concatenate %282, %283 in 0 : vector<1x32xf32>, vector<1x32xf32> -> vector<2x32xf32>
    %c0_136 = arith.constant 0 : index
    %c0_137 = arith.constant 0 : index
    %285 = vector.load %arg16[%c0_136, %c0_137] : memref<32x32xf32, #tpu.memory_space<vmem>>, vector<32x32xf32>
    %cst_138 = arith.constant dense<0.000000e+00> : vector<2x32xf32>
    %286 = tpu.matmul %284, %285, %cst_138 {dimension_numbers = #tpu.dot_dimension_numbers<[1], [0], [0], [1], [0, 0, 1, 1], [], []>} : vector<2x32xf32>, vector<32x32xf32>, vector<2x32xf32> -> vector<2x32xf32>
    %c0_139 = arith.constant 0 : index
    %c0_140 = arith.constant 0 : index
    %287 = vector.load %arg17[%c0_139, %c0_140] : memref<1x32xf32, #tpu.memory_space<vmem>>, vector<1x32xf32>
    %288 = vector.broadcast %287 : vector<1x32xf32> to vector<2x32xf32>
    %289 = arith.addf %286, %288 : vector<2x32xf32>
    %290 = math.tanh %289 : vector<2x32xf32>
    %c0_141 = arith.constant 0 : index
    %c0_142 = arith.constant 0 : index
    %291 = vector.load %arg18[%c0_141, %c0_142] : memref<32x1xf32, #tpu.memory_space<vmem>>, vector<32x1xf32>
    %cst_143 = arith.constant dense<0.000000e+00> : vector<2x1xf32>
    %292 = tpu.matmul %290, %291, %cst_143 {dimension_numbers = #tpu.dot_dimension_numbers<[1], [0], [0], [1], [0, 0, 1, 1], [], []>} : vector<2x32xf32>, vector<32x1xf32>, vector<2x1xf32> -> vector<2x1xf32>
    %c0_144 = arith.constant 0 : index
    %c0_145 = arith.constant 0 : index
    %293 = vector.load %arg19[%c0_144, %c0_145] : memref<1x1xf32, #tpu.memory_space<vmem>>, vector<1x1xf32>
    %294 = vector.broadcast %293 : vector<1x1xf32> to vector<2x1xf32>
    %295 = arith.addf %292, %294 : vector<2x1xf32>
    %c0_146 = arith.constant 0 : index
    %c0_147 = arith.constant 0 : index
    %296 = vector.load %arg20[%c0_146, %c0_147] : memref<2x1xf32, #tpu.memory_space<vmem>>, vector<2x1xf32>
    tpu.vector_store %arg20[%c0_146, %c0_147], %295 {strides = array<i32>} : memref<2x1xf32, #tpu.memory_space<vmem>>, vector<2x1xf32>,
    return
  }
}

</mosaic_0001>

<bundles_post_ra>
// kernel: grade_predictor_forward.1
= control target key start
LH: loop header
LB: loop body
LE: loop exit
PB: predicated region body
PF: predicated region fallthrough
CT: control target
= control target key end

     0   :  { %vm71_vm0 = vcmask 261120   ;;  %vm217_vm1 = vcmask 130048   ;;  %s2712_s28 = smov 80   ;;  %s2714_s29 = smov 112   ;;  %vm885_vm3 = vcmask 523264   ;;  %vm2719_vm4 = vmmov 0   ;;  %s3199_s0 = inlined_call_operand.vmem [shape: f32[16,32], index: 0, kind: input, shape index: {}]   ;;  %s3200_s4 = inlined_call_operand.vmem [shape: f32[2,32,96], index: 4, kind: input, shape index: {}]   ;;  %s3201_s2 = inlined_call_operand.vmem [shape: f32[1,32], index: 2, kind: input, shape index: {}]   ;;  %s3202_s3 = inlined_call_operand.vmem [shape: f32[1,32], index: 3, kind: input, shape index: {}]   ;;  %s3203_s5 = inlined_call_operand.vmem [shape: f32[2,1,96], index: 5, kind: input, shape index: {}]   ;;  %s3204_s1 = inlined_call_operand.vmem [shape: f32[16,16], index: 1, kind: input, shape index: {}]   ;;  %s3205_s6 = inlined_call_operand.vmem [shape: f32[2,32,32], index: 6, kind: input, shape index: {}]   ;;  %s3206_s7 = inlined_call_operand.vmem [shape: f32[2,1,32], index: 7, kind: input, shape index: {}]   ;;  %s3207_s10 = inlined_call_operand.vmem [shape: f32[2,32,64], index: 10, kind: input, shape index: {}]   ;;  %s3208_s8 = inlined_call_operand.vmem [shape: f32[2,1,32], index: 8, kind: input, shape index: {}]   ;;  %s3209_s9 = inlined_call_operand.vmem [shape: f32[2,1,32], index: 9, kind: input, shape index: {}]   ;;  %s3210_s12 = inlined_call_operand.vmem [shape: f32[2,64,32], index: 12, kind: input, shape index: {}]   ;;  %s3211_s11 = inlined_call_operand.vmem [shape: f32[2,1,64], index: 11, kind: input, shape index: {}]   ;;  %s3212_s13 = inlined_call_operand.vmem [shape: f32[2,1,32], index: 13, kind: input, shape index: {}]   ;;  %s3213_s14 = inlined_call_operand.vmem [shape: f32[2,1,32], index: 14, kind: input, shape index: {}]   ;;  %s3214_s15 = inlined_call_operand.vmem [shape: f32[2,1,32], index: 15, kind: input, shape index: {}]   ;;  %s3215_s16 = inlined_call_operand.vmem [shape: f32[32,32], index: 16, kind: input, shape index: {}]   ;;  %s3216_s18 = inlined_call_operand.vmem [shape: f32[32,1], index: 18, kind: input, shape index: {}]   ;;  %s3217_s19 = inlined_call_operand.<no memory space> [shape: f32[1,1], index: 19, kind: input, shape index: {}]   ;;  %s3218_s17 = inlined_call_operand.vmem [shape: f32[1,32], index: 17, kind: input, shape index: {}]   ;;  %s3219_s20 = inlined_call_operand.vmem [shape: f32[2,1], index: 20, kind: output, shape index: {}]  }
   0x1   :  { %3223 = sst [smem:[#allocation3_spill]] %s3199_s0  ;;  %vm2876_vm2 = vmpackc.low %vm217_vm1, %vm217_vm1  ;;  %v2894_v55 = vld [vmem:[%s3204_s1 + $0x8] sm:$0xff]  ;;  %v2899_v56 = vld [vmem:[%s3204_s1] sm:$0xff]  ;;  %s2715_s1 = smov 48   ;;  %vm1922_vm5 = vcmask 1040384   ;;  %vm2093_vm6 = vcmask 1024  }
   0x2   :  { %3224 = sst [smem:[#allocation4_spill]] %s3200_s4  ;;  %s3228_s23 = sld [smem:[#allocation3_spill]] }
   0x3   :  { %3225 = sst [smem:[#allocation5_spill]] %s3201_s2  ;;  %s3229_s26 = sld [smem:[#allocation4_spill]] }
   0x4   :  { %3226 = sst [smem:[#allocation6_spill]] %s3202_s3  ;;  %s3230_s22 = sld [smem:[#allocation5_spill]] }
   0x5   :  { %3227 = sst [smem:[#allocation7_spill]] %s3203_s5  ;;  %s3231_s2 = sld [smem:[#allocation6_spill]] }
   0x6   :  { %s3232_s27 = sld [smem:[#allocation7_spill]]  ;;  %s2713_s5 = smov 96  }
   0x7   :  { %s2717_s4 = smov 16  }
   0x8   :  { %v67_v0 = vld [vmem:[%s3228_s23] sm:$0xff]  ;;  %v68_v1 = vld [vmem:[%s3228_s23 + $0x8] sm:$0xff] }
   0x9   :  { %v72_v2 = vsel %vm71_vm0, %v67_v0, 0.0  ;;  %v75_v3 = vsel %vm71_vm0, %v68_v1, 0.0  ;;  %v117_v14 = vld [vmem:[%s3229_s26] sm:$0xff]  ;;  %v118_v15 = vld [vmem:[%s3229_s26 + $0x8] sm:$0xff]  ;;  %v119_v16 = vld [vmem:[%s3229_s26 + $0x10] sm:$0xff] }
   0xa   :  { %73 = vadd.xlane.f32.xlu0 %v72_v2  ;;  %v2469_v17 = vpack.c.bf16 %v118_v15, %v117_v14  ;;  %v120_v18 = vld [vmem:[%s3229_s26 + $0x18] sm:$0xff]  ;;  %v2099_v27 = vld [vmem:[%s3230_s22] ss:$0 sm:$0xff]  ;;  %s2716_s22 = smov 64  }
   0xb   :  { %v2473_v19 = vpack.c.bf16 %v120_v18, %v119_v16  ;;  %v2100_v29 = vld [vmem:[%s3231_s2] ss:$0 sm:$0xff] }
   0xc   :  { %2470 = vmatprep.subr.bf16.mxu0 %v2469_v17  ;;  %v2101_v36 = vld [vmem:[%s3232_s27] ss:$0 sm:$0xff] }
   0xd   :  { %2472 = vmatpush3.bf16.msra.mxu0 %v2469_v17 }
   0xe   :  { %76 = vadd.xlane.f32.xlu0 %v75_v3  ;;  %2474 = vmatprep.subr.bf16.mxu0 %v2473_v19 }
  0x11   :  { %2476 = vmatpush3.bf16.msra.mxu0 %v2473_v19 }
  0x97   :  { %v74_v4 = vpop.xlane.xlu0 %73 }
  0x98   :  { %v79_v5 = vmul.f32 0.03125, %v74_v4 }
  0x9a   :  { %v81_v6 = vsub.f32 %v67_v0, %v79_v5 }
  0x9b   :  { %v77_v7 = vpop.xlane.xlu0 %76 }
  0x9c   :  { %v80_v8 = vmul.f32 0.03125, %v77_v7  ;;  %v83_v9 = vmul.f32 %v81_v6, %v81_v6 }
  0x9e   :  { %v82_v10 = vsub.f32 %v68_v1, %v80_v8  ;;  %v85_v11 = vsel %vm71_vm0, %v83_v9, 0.0 }
  0x9f   :  { %86 = vadd.xlane.f32.xlu1 %v85_v11 }
  0xa0   :  { %v84_v12 = vmul.f32 %v82_v10, %v82_v10 }
  0xa2   :  { %v88_v13 = vsel %vm71_vm0, %v84_v12, 0.0 }
  0xa3   :  { %89 = vadd.xlane.f32.xlu1 %v88_v13 }
 0x12c   :  { %v87_v20 = vpop.xlane.xlu1 %86 }
 0x12d   :  { %v91_v21 = vmul.f32 0.03125, %v87_v20 }
 0x12f   :  { %v93_v22 = vadd.f32 1e-12, %v91_v21 }
 0x130   :  { %v90_v23 = vpop.xlane.xlu1 %89 }
 0x131   :  { %2650 = vrsqrt.f32 %v93_v22  ;;  %v92_v24 = vmul.f32 0.03125, %v90_v23 }
 0x133   :  { %v94_v25 = vadd.f32 1e-12, %v92_v24 }
 0x135   :  { %2652 = vrsqrt.f32 %v94_v25 }
 0x13b   :  { %v2651_v26 = vpop.eup %2650 }
 0x13c   :  { %v97_v28 = vmul.f32 %v2651_v26, %v81_v6 }
 0x13e   :  { %v105_v30 = vmul.f32 %v2099_v27, %v97_v28 }
 0x13f   :  { %v2653_v31 = vpop.eup %2652 }
 0x140   :  { %v98_v32 = vmul.f32 %v2653_v31, %v82_v10  ;;  %v2854_v33 = vadd.f32 %v2100_v29, %v105_v30 }
 0x142   :  { %v106_v34 = vmul.f32 %v2099_v27, %v98_v32  ;;  %2295 = vmatprep.mubr.msk.f32.mxu0 %vm71_vm0, %v2854_v33 }
 0x144   :  { %v2858_v35 = vadd.f32 %v2100_v29, %v106_v34 }
 0x146   :  { %2296 = vmatmul.mubr.msk.f32.vlgmr.msra.gmra.mrb[0].mxu0 %vm71_vm0, %v2858_v35 }
 0x219   :  { %v2297_v37 = vpop.f32.mrb[0].mxu0 }
 0x21a   :  { %v206_v38 = vadd.f32 %v2297_v37, %v2101_v36  ;;  %v200_v39 = vpop.f32.mrb[1].mxu0 }
 0x21b   :  { %v201_v40 = vadd.f32 %v2101_v36, %v200_v39 }
 0x21c   :  { %v210_v43 = vmul.f32 0.25, %v206_v38 }
 0x21d   :  { %v2865_v41 = vpack.i.bf16 %v206_v38, %v201_v40  ;;  %v209_v42 = vmul.f32 0.25, %v201_v40 }
 0x21f   :  { %2616 = vrot.lane.b32.xlu1 %v2865_v41, %s2712_s28  ;;  %2611 = vrot.lane.b32.xlu0 %v2865_v41, %s2713_s5 }
 0x220   :  { %2302 = vmatprep.mubr.msk.f32.mxu1 %vm217_vm1, %v209_v42 }
 0x223   :  { %412 = vrot.lane.b32.xlu1 %v209_v42, %s2714_s29 }
 0x227   :  { %414 = vrot.lane.b32.xlu1 %v210_v43, %s2714_s29 }
 0x291   :  { %v2617_v44 = vpop.permute.xlu1 %2616  ;;  %v2612_v45 = vpop.permute.xlu0 %2611 }
 0x292   :  { %v2619_v46 = vunpack.i.h.bf16 %v2617_v44  ;;  %v2618_v47 = vunpack.i.l.bf16 %v2617_v44  ;;  %v2614_v48 = vunpack.i.h.bf16 %v2612_v45  ;;  %v2613_v49 = vunpack.i.l.bf16 %v2612_v45 }
 0x294   :  { %v2477_v51 = vpack.c.bf16 %v2614_v48, %v2613_v49  ;;  %v2487_v52 = vpack.c.bf16 %v2619_v46, %v2618_v47  ;;  %v622_v47 = vld [vmem:[%s3205_s6] sm:$0xff]  ;;  %v623_v48 = vld [vmem:[%s3205_s6 + $0x8] sm:$0xff] }
 0x295   :  { %v413_v53 = vpop.permute.xlu1 %412  ;;  %v2497_v49 = vpack.c.bf16 %v623_v48, %v622_v47  ;;  %v874_v47 = vld [vmem:[%s3210_s12 + $0x20] sm:$0xff]  ;;  %v875_v48 = vld [vmem:[%s3210_s12 + $0x28] sm:$0xff] }
 0x296   :  { %2479 = vmatprep.subr.msk.bf16.mxu1 %vm2876_vm2, %v2477_v51 }
 0x297   :  { %2482 = vmatpush3.bf16.xpose.msk.msra.mxu1 %vm2876_vm2, %v2477_v51  ;;  %v624_v51 = vld [vmem:[%s3205_s6 + $0x10] sm:$0xff] }
 0x298   :  { %2489 = vmatprep.subr.msk.bf16.mxu1 %vm2876_vm2, %v2487_v52 }
 0x299   :  { %v415_v54 = vpop.permute.xlu1 %414 }
 0x29e   :  { %2303 = vmatmul.mubr.msk.f32.vlgmr.msra.gmra.mrb[0].mxu1 %vm217_vm1, %v210_v43 }
 0x29f   :  { %2492 = vmatpush3.bf16.xpose.msk.msra.mxu1 %vm2876_vm2, %v2487_v52  ;;  %2316 = vmatprep.mubr.msk.f32.mxu1 %vm217_vm1, %v413_v53  ;;  %v625_v52 = vld [vmem:[%s3205_s6 + $0x18] sm:$0xff] }
 0x2a0   :  { %v2501_v53 = vpack.c.bf16 %v625_v52, %v624_v51  ;;  %v876_v51 = vld [vmem:[%s3210_s12 + $0x30] sm:$0xff]  ;;  %v877_v52 = vld [vmem:[%s3210_s12 + $0x38] sm:$0xff] }
 0x2a6   :  { %2317 = vmatmul.mubr.msk.f32.vlgmr.msra.gmra.mrb[2].mxu1 %vm217_vm1, %v415_v54 }
 0x371   :  { %v2304_v57 = vpop.f32.mrb[0].mxu1 }
 0x372   :  { %v300_v58 = vadd.f32 %v2304_v57, %v2894_v55  ;;  %v294_v59 = vpop.f32.mrb[1].mxu1 }
 0x373   :  { %v295_v60 = vadd.f32 %v294_v59, %v2899_v56 }
 0x374   :  { %v306_v61 = vsel %vm217_vm1, %v300_v58, -inf }
 0x375   :  { %307 = vmax.xlane.f32.xlu1 %v306_v61  ;;  %v303_v62 = vsel %vm217_vm1, %v295_v60, -inf }
 0x376   :  { %304 = vmax.xlane.f32.xlu0 %v303_v62 }
 0x379   :  { %v2318_v63 = vpop.f32.mrb[2].mxu1 }
 0x37a   :  { %v494_v0 = vpop.f32.mrb[3].mxu1  ;;  %v500_v2 = vadd.f32 %v2318_v63, %v2894_v55 }
 0x37b   :  { %v495_v1 = vadd.f32 %v494_v0, %v2899_v56  ;;  %v2116_v0 = vld [vmem:[%s3206_s7] ss:$0 sm:$0xff] }
 0x37c   :  { %v506_v4 = vsel %vm217_vm1, %v500_v2, -inf }
 0x37d   :  { %v503_v3 = vsel %vm217_vm1, %v495_v1, -inf }
 0x37e   :  { %504 = vmax.xlane.f32.xlu0 %v503_v3 }
 0x382   :  { %507 = vmax.xlane.f32.xlu0 %v506_v4 }
 0x402   :  { %v308_v5 = vpop.xlane.xlu1 %307 }
 0x403   :  { %v310_v6 = vsub.f32 %v300_v58, %v308_v5  ;;  %v305_v7 = vpop.xlane.xlu0 %304 }
 0x404   :  { %v309_v8 = vsub.f32 %v295_v60, %v305_v7 }
 0x405   :  { %v313_v9 = vmul.f32 1.442695, %v310_v6 }
 0x406   :  { %v311_v10 = vmul.f32 1.442695, %v309_v8 }
 0x407   :  { %2654 = vpow2.f32 %v313_v9 }
 0x408   :  { %2656 = vpow2.f32 %v311_v10 }
 0x40b   :  { %v505_v11 = vpop.xlane.xlu0 %504 }
 0x40c   :  { %v509_v12 = vsub.f32 %v495_v1, %v505_v11 }
 0x40e   :  { %v511_v13 = vmul.f32 1.442695, %v509_v12 }
 0x40f   :  { %v508_v14 = vpop.xlane.xlu0 %507 }
 0x410   :  { %2658 = vpow2.f32 %v511_v13  ;;  %v510_v15 = vsub.f32 %v500_v2, %v508_v14 }
 0x411   :  { %v2655_v16 = vpop.eup %2654 }
 0x412   :  { %v2657_v17 = vpop.eup %2656  ;;  %v513_v18 = vmul.f32 1.442695, %v510_v15  ;;  %v318_v19 = vsel %vm217_vm1, %v2655_v16, 0.0 }
 0x413   :  { %319 = vadd.xlane.f32.xlu1 %v318_v19  ;;  %v315_v20 = vsel %vm217_vm1, %v2657_v17, 0.0 }
 0x414   :  { %2660 = vpow2.f32 %v513_v18  ;;  %316 = vadd.xlane.f32.xlu0 %v315_v20  ;;  %v761_v18 = vld [vmem:[%s3207_s10 + $0x8] sm:$0xff]  ;;  %v762_v20 = vld [vmem:[%s3207_s10 + $0x10] sm:$0xff] }
 0x41a   :  { %v2659_v21 = vpop.eup %2658 }
 0x41b   :  { %v515_v22 = vsel %vm217_vm1, %v2659_v21, 0.0 }
 0x41c   :  { %516 = vadd.xlane.f32.xlu0 %v515_v22 }
 0x41e   :  { %v2661_v23 = vpop.eup %2660 }
 0x41f   :  { %v518_v24 = vsel %vm217_vm1, %v2661_v23, 0.0 }
 0x420   :  { %519 = vadd.xlane.f32.xlu1 %v518_v24 }
 0x431   :  { %2626 = vrot.lane.b32.xlu1 %v2865_v41, %s2715_s1 }
 0x432   :  { %2621 = vrot.lane.b32.xlu0 %v2865_v41, %s2716_s22 }
 0x4a0   :  { %v320_v26 = vpop.xlane.xlu1 %319 }
 0x4a1   :  { %v317_v25 = vpop.xlane.xlu0 %316 }
 0x4a2   :  { %2662 = vrcp.f32 %v317_v25 }
 0x4a3   :  { %2664 = vrcp.f32 %v320_v26 }
 0x4a9   :  { %v517_v27 = vpop.xlane.xlu0 %516 }
 0x4aa   :  { %2666 = vrcp.f32 %v517_v27 }
 0x4ac   :  { %v2663_v28 = vpop.eup %2662 }
 0x4ad   :  { %v520_v29 = vpop.xlane.xlu1 %519  ;;  %v2622_v30 = vpop.permute.xlu0 %2621  ;;  %v323_v31 = vmul.f32 %v2663_v28, %v2657_v17 }
 0x4ae   :  { %2668 = vrcp.f32 %v520_v29  ;;  %v2624_v32 = vunpack.i.h.bf16 %v2622_v30  ;;  %v2623_v34 = vunpack.i.l.bf16 %v2622_v30  ;;  %v2665_v37 = vpop.eup %2664  ;;  %v2119_v30 = vld [vmem:[%s3208_s8] ss:$0 sm:$0xff] }
 0x4af   :  { %2309 = vmatprep.mubr.msk.f32.mxu0 %vm217_vm1, %v323_v31  ;;  %v324_v42 = vmul.f32 %v2665_v37, %v2655_v16 }
 0x4b0   :  { %v2483_v36 = vpack.c.bf16 %v2624_v32, %v2623_v34  ;;  %v2120_v32 = vld [vmem:[%s3209_s9] ss:$0 sm:$0xff] }
 0x4b1   :  { %v2627_v38 = vpop.permute.xlu1 %2626 }
 0x4b2   :  { %v2629_v39 = vunpack.i.h.bf16 %v2627_v38  ;;  %v2628_v40 = vunpack.i.l.bf16 %v2627_v38  ;;  %2484 = vmatprep.subr.bf16.mxu0 %v2483_v36 }
 0x4b3   :  { %2486 = vmatpush3.bf16.msra.mxu0 %v2483_v36 }
 0x4b4   :  { %v2667_v41 = vpop.eup %2666  ;;  %v2493_v43 = vpack.c.bf16 %v2629_v39, %v2628_v40 }
 0x4b5   :  { %v523_v44 = vmul.f32 %v2667_v41, %v2659_v21  ;;  %v763_v21 = vld [vmem:[%s3207_s10 + $0x18] sm:$0xff]  ;;  %v870_v41 = vld [vmem:[%s3210_s12] sm:$0xff] }
 0x4b6   :  { %2310 = vmatmul.mubr.msk.f32.vlgmr.msra.gmra.mrb[2].mxu0 %vm217_vm1, %v324_v42  ;;  %2494 = vmatprep.subr.bf16.mxu0 %v2493_v43  ;;  %v2509_v22 = vpack.c.bf16 %v763_v21, %v762_v20  ;;  %v871_v42 = vld [vmem:[%s3210_s12 + $0x8] sm:$0xff] }
 0x4b7   :  { %2496 = vmatpush3.bf16.msra.mxu0 %v2493_v43  ;;  %2323 = vmatprep.mubr.msk.f32.mxu0 %vm217_vm1, %v523_v44  ;;  %v2513_v43 = vpack.c.bf16 %v871_v42, %v870_v41  ;;  %v872_v44 = vld [vmem:[%s3210_s12 + $0x10] sm:$0xff] }
 0x4b8   :  { %v2669_v45 = vpop.eup %2668  ;;  %2498 = vmatprep.subr.bf16.mxu0 %v2497_v49 }
 0x4b9   :  { %v524_v46 = vmul.f32 %v2669_v45, %v2661_v23  ;;  %v873_v45 = vld [vmem:[%s3210_s12 + $0x18] sm:$0xff] }
 0x4bb   :  { %2324 = vmatmul.mubr.msk.f32.vlgmr.msra.gmra.mrb[4].mxu0 %vm217_vm1, %v524_v46  ;;  %v2517_v46 = vpack.c.bf16 %v873_v45, %v872_v44 }
 0x4bc   :  { %2500 = vmatpush3.bf16.msra.mxu0 %v2497_v49  ;;  %v2521_v49 = vpack.c.bf16 %v875_v48, %v874_v47  ;;  %v2127_v47 = vld [vmem:[%s3213_s14] ss:$0 sm:$0xff] }
 0x4bd   :  { %2502 = vmatprep.subr.bf16.mxu0 %v2501_v53 }
 0x4c0   :  { %2504 = vmatpush3.bf16.msra.mxu0 %v2501_v53  ;;  %v2525_v53 = vpack.c.bf16 %v877_v52, %v876_v51  ;;  %v2128_v52 = vld [vmem:[%s3214_s15] ss:$0 sm:$0xff] }
 0x4c1   :  { %2514 = vmatprep.subr.bf16.mxu0 %v2513_v43 }
 0x589   :  { %v2311_v54 = vpop.f32.mrb[2].mxu0 }
 0x58a   :  { %v403_v57 = vpop.f32.mrb[3].mxu0 }
 0x58e   :  { %v2325_v58 = vpop.f32.mrb[4].mxu0 }
 0x58f   :  { %v603_v59 = vpop.f32.mrb[5].mxu0 }
 0x590   :  { %614 = vrot.lane.b32.xlu1 %v603_v59, %s2717_s4 }
 0x594   :  { %616 = vrot.lane.b32.xlu1 %v2325_v58, %s2717_s4 }
 0x602   :  { %v615_v60 = vpop.permute.xlu1 %614 }
 0x603   :  { %v620_v61 = vsel %vm217_vm1, %v403_v57, %v615_v60 }
 0x604   :  { %2334 = vmatprep.mubr.msk.f32.mxu0 %vm71_vm0, %v620_v61 }
 0x606   :  { %v617_v62 = vpop.permute.xlu1 %616 }
 0x607   :  { %v621_v63 = vsel %vm217_vm1, %v2311_v54, %v617_v62  ;;  %v2121_v54 = vld [vmem:[%s3211_s11] ss:$0 sm:$0xff] }
 0x608   :  { %2335 = vmatmul.mubr.msk.f32.vlgmr.msra.gmra.mrb[6].mxu0 %vm71_vm0, %v621_v63 }
 0x609   :  { %2516 = vmatpush3.bf16.msra.mxu0 %v2513_v43 }
 0x60a   :  { %2518 = vmatprep.subr.bf16.mxu0 %v2517_v46 }
 0x60d   :  { %2520 = vmatpush3.bf16.msra.mxu0 %v2517_v46 }
 0x60e   :  { %2522 = vmatprep.subr.bf16.mxu0 %v2521_v49 }
 0x611   :  { %2524 = vmatpush3.bf16.msra.mxu0 %v2521_v49 }
 0x612   :  { %2526 = vmatprep.subr.bf16.mxu0 %v2525_v53 }
 0x615   :  { %2528 = vmatpush3.bf16.msra.mxu0 %v2525_v53 }
 0x6db   :  { %v2336_v1 = vpop.f32.mrb[6].mxu0 }
 0x6dc   :  { %v711_v2 = vadd.f32 %v2336_v1, %v2116_v0  ;;  %v705_v3 = vpop.f32.mrb[7].mxu0 }
 0x6dd   :  { %v706_v4 = vadd.f32 %v2116_v0, %v705_v3 }
 0x6de   :  { %v715_v5 = vadd.f32 %v711_v2, %v2858_v35 }
 0x6df   :  { %v714_v6 = vadd.f32 %v706_v4, %v2854_v33  ;;  %v760_v33 = vld [vmem:[%s3207_s10] sm:$0xff] }
 0x6e0   :  { %v721_v7 = vsel %vm71_vm0, %v715_v5, 0.0  ;;  %v2505_v19 = vpack.c.bf16 %v761_v18, %v760_v33 }
 0x6e1   :  { %722 = vadd.xlane.f32.xlu1 %v721_v7  ;;  %v718_v8 = vsel %vm71_vm0, %v714_v6, 0.0 }
 0x6e2   :  { %719 = vadd.xlane.f32.xlu0 %v718_v8  ;;  %2506 = vmatprep.subr.bf16.mxu1 %v2505_v19 }
 0x6e3   :  { %2508 = vmatpush3.bf16.msra.mxu1 %v2505_v19 }
 0x6e4   :  { %2510 = vmatprep.subr.bf16.mxu1 %v2509_v22 }
 0x6e7   :  { %2512 = vmatpush3.bf16.msra.mxu1 %v2509_v22 }
 0x76e   :  { %v723_v9 = vpop.xlane.xlu1 %722 }
 0x76f   :  { %v725_v10 = vmul.f32 0.03125, %v723_v9  ;;  %v720_v11 = vpop.xlane.xlu0 %719 }
 0x770   :  { %v724_v12 = vmul.f32 0.03125, %v720_v11 }
 0x771   :  { %v727_v13 = vsub.f32 %v715_v5, %v725_v10 }
 0x772   :  { %v726_v14 = vsub.f32 %v714_v6, %v724_v12 }
 0x773   :  { %v729_v17 = vmul.f32 %v727_v13, %v727_v13 }
 0x774   :  { %v728_v15 = vmul.f32 %v726_v14, %v726_v14 }
 0x775   :  { %v733_v35 = vsel %vm71_vm0, %v729_v17, 0.0 }
 0x776   :  { %v730_v16 = vsel %vm71_vm0, %v728_v15, 0.0  ;;  %v2124_v15 = vld [vmem:[%s3212_s13] ss:$0 sm:$0xff] }
 0x777   :  { %731 = vadd.xlane.f32.xlu0 %v730_v16 }
 0x77b   :  { %734 = vadd.xlane.f32.xlu0 %v733_v35 }
 0x804   :  { %v732_v23 = vpop.xlane.xlu0 %731 }
 0x805   :  { %v736_v24 = vmul.f32 0.03125, %v732_v23 }
 0x807   :  { %v738_v25 = vadd.f32 1e-12, %v736_v24 }
 0x808   :  { %v735_v26 = vpop.xlane.xlu0 %734 }
 0x809   :  { %2670 = vrsqrt.f32 %v738_v25  ;;  %v737_v27 = vmul.f32 0.03125, %v735_v26 }
 0x80b   :  { %v739_v28 = vadd.f32 1e-12, %v737_v27 }
 0x80d   :  { %2672 = vrsqrt.f32 %v739_v28 }
 0x813   :  { %v2671_v29 = vpop.eup %2670 }
 0x814   :  { %v742_v31 = vmul.f32 %v2671_v29, %v726_v14 }
 0x816   :  { %v750_v34 = vmul.f32 %v2119_v30, %v742_v31 }
 0x817   :  { %v2673_v36 = vpop.eup %2672 }
 0x818   :  { %v743_v37 = vmul.f32 %v2673_v36, %v727_v13  ;;  %v758_v38 = vadd.f32 %v2120_v32, %v750_v34  ;;  %v2130_v34 = vld [vmem:[%s3229_s26 + $0x28] sm:$0xff] }
 0x81a   :  { %v751_v39 = vmul.f32 %v2119_v30, %v743_v37  ;;  %2345 = vmatprep.mubr.msk.f32.mxu1 %vm71_vm0, %v758_v38  ;;  %v2131_v37 = vld [vmem:[%s3229_s26 + $0x30] sm:$0xff] }
 0x81c   :  { %v759_v40 = vadd.f32 %v2120_v32, %v751_v39  ;;  %v2129_v32 = vld [vmem:[%s3229_s26 + $0x20] sm:$0xff] }
 0x81d   :  { %v2529_v36 = vpack.c.bf16 %v2130_v34, %v2129_v32 }
 0x81e   :  { %2346 = vmatmul.mubr.msk.f32.vlgmr.msra.gmra.mrb[4].mxu1 %vm71_vm0, %v759_v40 }
 0x81f   :  { %2530 = vmatprep.subr.bf16.mxu1 %v2529_v36 }
 0x820   :  { %2532 = vmatpush3.bf16.msra.mxu1 %v2529_v36 }
 0x8f1   :  { %v2347_v57 = vpop.f32.mrb[4].mxu1 }
 0x8f2   :  { %v849_v58 = vadd.f32 %v2347_v57, %v2121_v54  ;;  %v843_v59 = vpop.f32.mrb[5].mxu1 }
 0x8f3   :  { %v844_v60 = vadd.f32 %v2121_v54, %v843_v59  ;;  %v2134_v59 = vld [vmem:[%s3232_s27 + $0x1] ss:$0 sm:$0xff] }
 0x8f4   :  { %v853_v61 = vmul.f32 %v849_v58, %v849_v58 }
 0x8f5   :  { %v852_v62 = vmul.f32 %v844_v60, %v844_v60 }
 0x8f6   :  { %v855_v63 = vmul.f32 %v853_v61, %v849_v58 }
 0x8f7   :  { %v854_v0 = vmul.f32 %v852_v62, %v844_v60 }
 0x8f8   :  { %v857_v1 = vmul.f32 0.044715, %v855_v63 }
 0x8f9   :  { %v856_v2 = vmul.f32 0.044715, %v854_v0 }
 0x8fa   :  { %v859_v3 = vadd.f32 %v857_v1, %v849_v58 }
 0x8fb   :  { %v858_v4 = vadd.f32 %v856_v2, %v844_v60 }
 0x8fc   :  { %v861_v5 = vmul.f32 0.7978846, %v859_v3 }
 0x8fd   :  { %v860_v6 = vmul.f32 0.7978846, %v858_v4 }
 0x8fe   :  { %2674 = vtanh.f32 %v861_v5 }
 0x8ff   :  { %2676 = vtanh.f32 %v860_v6 }
 0x908   :  { %v2675_v7 = vpop.eup %2674 }
 0x909   :  { %v2677_v8 = vpop.eup %2676  ;;  %v865_v9 = vadd.f32 1.0, %v2675_v7 }
 0x90a   :  { %v864_v10 = vadd.f32 1.0, %v2677_v8 }
 0x90b   :  { %v867_v11 = vmul.f32 0.5, %v865_v9 }
 0x90c   :  { %v866_v12 = vmul.f32 0.5, %v864_v10 }
 0x90d   :  { %v869_v14 = vmul.f32 %v867_v11, %v849_v58 }
 0x90e   :  { %v868_v13 = vmul.f32 %v866_v12, %v844_v60 }
 0x910   :  { %2364 = vmatprep.mubr.msk.f32.mxu0 %vm885_vm3, %v868_v13 }
 0x911   :  { %2365 = vmatmul.mubr.msk.f32.vlgmr.msra.gmra.mrb[8].mxu0 %vm885_vm3, %v869_v14 }
 0x9e4   :  { %v2366_v16 = vpop.f32.mrb[8].mxu0 }
 0x9e5   :  { %v964_v17 = vadd.f32 %v2366_v16, %v2124_v15  ;;  %v958_v35 = vpop.f32.mrb[9].mxu0 }
 0x9e6   :  { %v959_v33 = vadd.f32 %v2124_v15, %v958_v35 }
 0x9e7   :  { %v968_v18 = vadd.f32 %v964_v17, %v759_v40 }
 0x9e8   :  { %v967_v19 = vadd.f32 %v959_v33, %v758_v38  ;;  %v2132_v38 = vld [vmem:[%s3229_s26 + $0x38] sm:$0xff] }
 0x9e9   :  { %v974_v20 = vsel %vm71_vm0, %v968_v18, 0.0  ;;  %v2533_v39 = vpack.c.bf16 %v2132_v38, %v2131_v37 }
 0x9ea   :  { %975 = vadd.xlane.f32.xlu1 %v974_v20  ;;  %v971_v21 = vsel %vm71_vm0, %v967_v19, 0.0 }
 0x9eb   :  { %972 = vadd.xlane.f32.xlu0 %v971_v21  ;;  %2534 = vmatprep.subr.bf16.mxu1 %v2533_v39 }
 0x9ec   :  { %2536 = vmatpush3.bf16.msra.mxu1 %v2533_v39 }
 0xa77   :  { %v976_v22 = vpop.xlane.xlu1 %975 }
 0xa78   :  { %v978_v23 = vmul.f32 0.03125, %v976_v22  ;;  %v973_v24 = vpop.xlane.xlu0 %972 }
 0xa79   :  { %v977_v25 = vmul.f32 0.03125, %v973_v24 }
 0xa7a   :  { %v980_v26 = vsub.f32 %v968_v18, %v978_v23 }
 0xa7b   :  { %v979_v27 = vsub.f32 %v967_v19, %v977_v25 }
 0xa7c   :  { %v982_v28 = vmul.f32 %v980_v26, %v980_v26 }
 0xa7d   :  { %v981_v29 = vmul.f32 %v979_v27, %v979_v27 }
 0xa7e   :  { %v986_v30 = vsel %vm71_vm0, %v982_v28, 0.0 }
 0xa7f   :  { %987 = vadd.xlane.f32.xlu1 %v986_v30  ;;  %v983_v31 = vsel %vm71_vm0, %v981_v29, 0.0 }
 0xa80   :  { %984 = vadd.xlane.f32.xlu0 %v983_v31 }
 0xb0c   :  { %v988_v40 = vpop.xlane.xlu1 %987 }
 0xb0d   :  { %v990_v41 = vmul.f32 0.03125, %v988_v40  ;;  %v985_v42 = vpop.xlane.xlu0 %984 }
 0xb0e   :  { %v989_v43 = vmul.f32 0.03125, %v985_v42 }
 0xb0f   :  { %v992_v44 = vadd.f32 1e-12, %v990_v41 }
 0xb10   :  { %v991_v45 = vadd.f32 1e-12, %v989_v43 }
 0xb11   :  { %2678 = vrsqrt.f32 %v992_v44 }
 0xb12   :  { %2680 = vrsqrt.f32 %v991_v45 }
 0xb1b   :  { %v2679_v46 = vpop.eup %2678 }
 0xb1c   :  { %v2681_v48 = vpop.eup %2680  ;;  %v996_v49 = vmul.f32 %v2679_v46, %v980_v26 }
 0xb1d   :  { %v995_v51 = vmul.f32 %v2681_v48, %v979_v27 }
 0xb1e   :  { %v1004_v53 = vmul.f32 %v2127_v47, %v996_v49 }
 0xb1f   :  { %v1003_v54 = vmul.f32 %v2127_v47, %v995_v51 }
 0xb20   :  { %v3024_v58 = vadd.f32 %v2128_v52, %v1004_v53 }
 0xb21   :  { %v3022_v57 = vadd.f32 %v2128_v52, %v1003_v54 }
 0xb23   :  { %2375 = vmatprep.mubr.msk.f32.mxu1 %vm71_vm0, %v3022_v57 }
 0xb24   :  { %2376 = vmatmul.mubr.msk.f32.vlgmr.msra.gmra.mrb[6].mxu1 %vm71_vm0, %v3024_v58 }
 0xbf7   :  { %v2377_v60 = vpop.f32.mrb[6].mxu1 }
 0xbf8   :  { %v1104_v61 = vadd.f32 %v2377_v60, %v2134_v59  ;;  %v1098_v62 = vpop.f32.mrb[7].mxu1 }
 0xbf9   :  { %v1099_v63 = vadd.f32 %v2134_v59, %v1098_v62 }
 0xbfa   :  { %v1108_v2 = vmul.f32 0.25, %v1104_v61 }
 0xbfb   :  { %v3033_v0 = vpack.i.bf16 %v1104_v61, %v1099_v63  ;;  %v1107_v1 = vmul.f32 0.25, %v1099_v63 }
 0xbfd   :  { %2636 = vrot.lane.b32.xlu1 %v3033_v0, %s2712_s28  ;;  %2631 = vrot.lane.b32.xlu0 %v3033_v0, %s2713_s5 }
 0xbfe   :  { %2382 = vmatprep.mubr.msk.f32.mxu1 %vm217_vm1, %v1107_v1 }
 0xc01   :  { %1309 = vrot.lane.b32.xlu1 %v1107_v1, %s2714_s29 }
 0xc05   :  { %1311 = vrot.lane.b32.xlu1 %v1108_v2, %s2714_s29 }
 0xc6f   :  { %v2637_v3 = vpop.permute.xlu1 %2636  ;;  %v2632_v4 = vpop.permute.xlu0 %2631 }
 0xc70   :  { %v2639_v5 = vunpack.i.h.bf16 %v2637_v3  ;;  %v2638_v6 = vunpack.i.l.bf16 %v2637_v3  ;;  %v2634_v7 = vunpack.i.h.bf16 %v2632_v4  ;;  %v2633_v8 = vunpack.i.l.bf16 %v2632_v4  ;;  %v2149_v3 = vld [vmem:[%s3205_s6 + $0x20] sm:$0xff]  ;;  %v2150_v4 = vld [vmem:[%s3205_s6 + $0x28] sm:$0xff] }
 0xc72   :  { %v2537_v9 = vpack.c.bf16 %v2634_v7, %v2633_v8  ;;  %v2547_v10 = vpack.c.bf16 %v2639_v5, %v2638_v6  ;;  %v2557_v5 = vpack.c.bf16 %v2150_v4, %v2149_v3  ;;  %v2151_v6 = vld [vmem:[%s3205_s6 + $0x30] sm:$0xff]  ;;  %v2152_v7 = vld [vmem:[%s3205_s6 + $0x38] sm:$0xff] }
 0xc73   :  { %v1310_v11 = vpop.permute.xlu1 %1309  ;;  %v2561_v8 = vpack.c.bf16 %v2152_v7, %v2151_v6  ;;  %v2175_v3 = vld [vmem:[%s3210_s12 + $0x70] sm:$0xff]  ;;  %v2176_v4 = vld [vmem:[%s3210_s12 + $0x78] sm:$0xff]  ;;  %v2166_v6 = vld [vmem:[%s3211_s11 + $0x1] ss:$0 sm:$0xff] }
 0xc74   :  { %2539 = vmatprep.subr.msk.bf16.mxu1 %vm2876_vm2, %v2537_v9 }
 0xc75   :  { %2542 = vmatpush3.bf16.xpose.msk.msra.mxu1 %vm2876_vm2, %v2537_v9 }
 0xc76   :  { %2549 = vmatprep.subr.msk.bf16.mxu1 %vm2876_vm2, %v2547_v10 }
 0xc77   :  { %v1312_v12 = vpop.permute.xlu1 %1311 }
 0xc7c   :  { %2383 = vmatmul.mubr.msk.f32.vlgmr.msra.gmra.mrb[8].mxu1 %vm217_vm1, %v1108_v2 }
 0xc7d   :  { %2552 = vmatpush3.bf16.xpose.msk.msra.mxu1 %vm2876_vm2, %v2547_v10  ;;  %2396 = vmatprep.mubr.msk.f32.mxu1 %vm217_vm1, %v1310_v11 }
 0xc84   :  { %2397 = vmatmul.mubr.msk.f32.vlgmr.msra.gmra.mrb[10].mxu1 %vm217_vm1, %v1312_v12 }
 0xd4f   :  { %v2384_v13 = vpop.f32.mrb[8].mxu1 }
 0xd50   :  { %v1197_v14 = vadd.f32 %v2384_v13, %v2894_v55  ;;  %v1191_v15 = vpop.f32.mrb[9].mxu1 }
 0xd51   :  { %v1192_v16 = vadd.f32 %v1191_v15, %v2899_v56 }
 0xd52   :  { %v1203_v17 = vsel %vm217_vm1, %v1197_v14, -inf }
 0xd53   :  { %1204 = vmax.xlane.f32.xlu1 %v1203_v17  ;;  %v1200_v35 = vsel %vm217_vm1, %v1192_v16, -inf  ;;  %v2154_v17 = vld [vmem:[%s3206_s7 + $0x1] ss:$0 sm:$0xff] }
 0xd54   :  { %1201 = vmax.xlane.f32.xlu0 %v1200_v35 }
 0xd57   :  { %v2398_v33 = vpop.f32.mrb[10].mxu1 }
 0xd58   :  { %v1391_v50 = vpop.f32.mrb[11].mxu1  ;;  %v1397_v19 = vadd.f32 %v2398_v33, %v2894_v55 }
 0xd59   :  { %v1392_v18 = vadd.f32 %v1391_v50, %v2899_v56 }
 0xd5a   :  { %v1403_v21 = vsel %vm217_vm1, %v1397_v19, -inf }
 0xd5b   :  { %v1400_v20 = vsel %vm217_vm1, %v1392_v18, -inf }
 0xd5c   :  { %1401 = vmax.xlane.f32.xlu0 %v1400_v20 }
 0xd60   :  { %1404 = vmax.xlane.f32.xlu0 %v1403_v21 }
 0xde0   :  { %v1205_v22 = vpop.xlane.xlu1 %1204 }
 0xde1   :  { %v1207_v23 = vsub.f32 %v1197_v14, %v1205_v22  ;;  %v1202_v24 = vpop.xlane.xlu0 %1201 }
 0xde2   :  { %v1206_v25 = vsub.f32 %v1192_v16, %v1202_v24 }
 0xde3   :  { %v1210_v26 = vmul.f32 1.442695, %v1207_v23 }
 0xde4   :  { %v1208_v27 = vmul.f32 1.442695, %v1206_v25 }
 0xde5   :  { %2682 = vpow2.f32 %v1210_v26 }
 0xde6   :  { %2684 = vpow2.f32 %v1208_v27 }
 0xde9   :  { %v1402_v28 = vpop.xlane.xlu0 %1401 }
 0xdea   :  { %v1406_v29 = vsub.f32 %v1392_v18, %v1402_v28 }
 0xdec   :  { %v1408_v30 = vmul.f32 1.442695, %v1406_v29 }
 0xded   :  { %v1405_v56 = vpop.xlane.xlu0 %1404 }
 0xdee   :  { %2686 = vpow2.f32 %v1408_v30  ;;  %v1407_v55 = vsub.f32 %v1397_v19, %v1405_v56 }
 0xdef   :  { %v2683_v31 = vpop.eup %2682 }
 0xdf0   :  { %v2685_v32 = vpop.eup %2684  ;;  %v1410_v34 = vmul.f32 1.442695, %v1407_v55  ;;  %v1215_v36 = vsel %vm217_vm1, %v2683_v31, 0.0  ;;  %v2162_v55 = vld [vmem:[%s3207_s10 + $0x28] sm:$0xff] }
 0xdf1   :  { %1216 = vadd.xlane.f32.xlu1 %v1215_v36  ;;  %v1212_v37 = vsel %vm217_vm1, %v2685_v32, 0.0 }
 0xdf2   :  { %2688 = vpow2.f32 %v1410_v34  ;;  %1213 = vadd.xlane.f32.xlu0 %v1212_v37  ;;  %v2164_v34 = vld [vmem:[%s3207_s10 + $0x38] sm:$0xff] }
 0xdf8   :  { %v2687_v38 = vpop.eup %2686 }
 0xdf9   :  { %v1412_v39 = vsel %vm217_vm1, %v2687_v38, 0.0 }
 0xdfa   :  { %1413 = vadd.xlane.f32.xlu0 %v1412_v39 }
 0xdfc   :  { %v2689_v40 = vpop.eup %2688 }
 0xdfd   :  { %v1415_v41 = vsel %vm217_vm1, %v2689_v40, 0.0 }
 0xdfe   :  { %1416 = vadd.xlane.f32.xlu1 %v1415_v41 }
 0xe0f   :  { %2646 = vrot.lane.b32.xlu1 %v3033_v0, %s2715_s1 }
 0xe10   :  { %2641 = vrot.lane.b32.xlu0 %v3033_v0, %s2716_s22 }
 0xe7e   :  { %v1217_v43 = vpop.xlane.xlu1 %1216 }
 0xe7f   :  { %v1214_v42 = vpop.xlane.xlu0 %1213 }
 0xe80   :  { %2690 = vrcp.f32 %v1214_v42 }
 0xe81   :  { %2692 = vrcp.f32 %v1217_v43 }
 0xe87   :  { %v1414_v44 = vpop.xlane.xlu0 %1413 }
 0xe88   :  { %2694 = vrcp.f32 %v1414_v44  ;;  %v2159_v44 = vld [vmem:[%s3208_s8 + $0x1] ss:$0 sm:$0xff] }
 0xe8a   :  { %v2691_v45 = vpop.eup %2690 }
 0xe8b   :  { %v1417_v46 = vpop.xlane.xlu1 %1416  ;;  %v2642_v47 = vpop.permute.xlu0 %2641  ;;  %v1220_v48 = vmul.f32 %v2691_v45, %v2685_v32  ;;  %v2163_v32 = vld [vmem:[%s3207_s10 + $0x30] sm:$0xff] }
 0xe8c   :  { %2696 = vrcp.f32 %v1417_v46  ;;  %v2644_v49 = vunpack.i.h.bf16 %v2642_v47  ;;  %v2643_v51 = vunpack.i.l.bf16 %v2642_v47  ;;  %v2693_v53 = vpop.eup %2692  ;;  %v2569_v36 = vpack.c.bf16 %v2164_v34, %v2163_v32  ;;  %v2160_v46 = vld [vmem:[%s3209_s9 + $0x1] ss:$0 sm:$0xff] }
 0xe8d   :  { %2389 = vmatprep.mubr.msk.f32.mxu0 %vm217_vm1, %v1220_v48  ;;  %v1221_v62 = vmul.f32 %v2693_v53, %v2683_v31 }
 0xe8e   :  { %v2543_v52 = vpack.c.bf16 %v2644_v49, %v2643_v51 }
 0xe8f   :  { %v2647_v54 = vpop.permute.xlu1 %2646 }
 0xe90   :  { %v2649_v59 = vunpack.i.h.bf16 %v2647_v54  ;;  %v2648_v60 = vunpack.i.l.bf16 %v2647_v54  ;;  %2544 = vmatprep.subr.bf16.mxu0 %v2543_v52  ;;  %v2169_v54 = vld [vmem:[%s3210_s12 + $0x40] sm:$0xff] }
 0xe91   :  { %2546 = vmatpush3.bf16.msra.mxu0 %v2543_v52 }
 0xe92   :  { %v2695_v61 = vpop.eup %2694  ;;  %v2553_v63 = vpack.c.bf16 %v2649_v59, %v2648_v60  ;;  %v2170_v59 = vld [vmem:[%s3210_s12 + $0x48] sm:$0xff] }
 0xe93   :  { %v1420_v0 = vmul.f32 %v2695_v61, %v2687_v38  ;;  %v2573_v60 = vpack.c.bf16 %v2170_v59, %v2169_v54  ;;  %v2171_v61 = vld [vmem:[%s3210_s12 + $0x50] sm:$0xff] }
 0xe94   :  { %2390 = vmatmul.mubr.msk.f32.vlgmr.msra.gmra.mrb[10].mxu0 %vm217_vm1, %v1221_v62  ;;  %2554 = vmatprep.subr.bf16.mxu0 %v2553_v63  ;;  %v2172_v62 = vld [vmem:[%s3210_s12 + $0x58] sm:$0xff] }
 0xe95   :  { %2556 = vmatpush3.bf16.msra.mxu0 %v2553_v63  ;;  %2403 = vmatprep.mubr.msk.f32.mxu0 %vm217_vm1, %v1420_v0  ;;  %v2577_v63 = vpack.c.bf16 %v2172_v62, %v2171_v61  ;;  %v2173_v0 = vld [vmem:[%s3210_s12 + $0x60] sm:$0xff] }
 0xe96   :  { %v2697_v1 = vpop.eup %2696  ;;  %2558 = vmatprep.subr.bf16.mxu0 %v2557_v5 }
 0xe97   :  { %v1421_v2 = vmul.f32 %v2697_v1, %v2689_v40  ;;  %v2174_v1 = vld [vmem:[%s3210_s12 + $0x68] sm:$0xff] }
 0xe99   :  { %2404 = vmatmul.mubr.msk.f32.vlgmr.msra.gmra.mrb[12].mxu0 %vm217_vm1, %v1421_v2  ;;  %v2581_v2 = vpack.c.bf16 %v2174_v1, %v2173_v0 }
 0xe9a   :  { %2560 = vmatpush3.bf16.msra.mxu0 %v2557_v5  ;;  %v2585_v5 = vpack.c.bf16 %v2176_v4, %v2175_v3 }
 0xe9b   :  { %2562 = vmatprep.subr.bf16.mxu0 %v2561_v8 }
 0xe9e   :  { %2564 = vmatpush3.bf16.msra.mxu0 %v2561_v8 }
 0xe9f   :  { %2574 = vmatprep.subr.bf16.mxu0 %v2573_v60 }
 0xf67   :  { %v2391_v9 = vpop.f32.mrb[10].mxu0 }
 0xf68   :  { %v1300_v10 = vpop.f32.mrb[11].mxu0 }
 0xf6c   :  { %v2405_v11 = vpop.f32.mrb[12].mxu0 }
 0xf6d   :  { %v1500_v12 = vpop.f32.mrb[13].mxu0 }
 0xf6e   :  { %1511 = vrot.lane.b32.xlu1 %v1500_v12, %s2717_s4 }
 0xf72   :  { %1513 = vrot.lane.b32.xlu1 %v2405_v11, %s2717_s4 }
 0xfe0   :  { %v1512_v13 = vpop.permute.xlu1 %1511 }
 0xfe1   :  { %v1517_v14 = vsel %vm217_vm1, %v1300_v10, %v1512_v13 }
 0xfe2   :  { %2414 = vmatprep.mubr.msk.f32.mxu0 %vm71_vm0, %v1517_v14 }
 0xfe4   :  { %v1514_v15 = vpop.permute.xlu1 %1513 }
 0xfe5   :  { %v1518_v16 = vsel %vm217_vm1, %v2391_v9, %v1514_v15 }
 0xfe6   :  { %2415 = vmatmul.mubr.msk.f32.vlgmr.msra.gmra.mrb[14].mxu0 %vm71_vm0, %v1518_v16 }
 0xfe7   :  { %2576 = vmatpush3.bf16.msra.mxu0 %v2573_v60 }
 0xfe8   :  { %2578 = vmatprep.subr.bf16.mxu0 %v2577_v63 }
 0xfeb   :  { %2580 = vmatpush3.bf16.msra.mxu0 %v2577_v63  ;;  %v2183_v63 = vld [vmem:[%s3213_s14 + $0x1] ss:$0 sm:$0xff] }
 0xfec   :  { %2582 = vmatprep.subr.bf16.mxu0 %v2581_v2 }
 0xfef   :  { %2584 = vmatpush3.bf16.msra.mxu0 %v2581_v2  ;;  %v2184_v2 = vld [vmem:[%s3214_s15 + $0x1] ss:$0 sm:$0xff] }
 0xff0   :  { %2586 = vmatprep.subr.bf16.mxu0 %v2585_v5 }
 0xff3   :  { %2588 = vmatpush3.bf16.msra.mxu0 %v2585_v5 }
0x10b9   :  { %v2416_v35 = vpop.f32.mrb[14].mxu0 }
0x10ba   :  { %v1610_v33 = vadd.f32 %v2416_v35, %v2154_v17  ;;  %v1604_v50 = vpop.f32.mrb[15].mxu0 }
0x10bb   :  { %v1605_v18 = vadd.f32 %v2154_v17, %v1604_v50 }
0x10bc   :  { %v1614_v19 = vadd.f32 %v1610_v33, %v3024_v58 }
0x10bd   :  { %v1613_v20 = vadd.f32 %v1605_v18, %v3022_v57  ;;  %v2161_v57 = vld [vmem:[%s3207_s10 + $0x20] sm:$0xff] }
0x10be   :  { %v1622_v21 = vsel %vm71_vm0, %v1614_v19, 0.0  ;;  %v2565_v31 = vpack.c.bf16 %v2162_v55, %v2161_v57 }
0x10bf   :  { %1623 = vadd.xlane.f32.xlu1 %v1622_v21  ;;  %v1619_v22 = vsel %vm71_vm0, %v1613_v20, 0.0 }
0x10c0   :  { %1620 = vadd.xlane.f32.xlu0 %v1619_v22  ;;  %2566 = vmatprep.subr.bf16.mxu1 %v2565_v31 }
0x10c1   :  { %2568 = vmatpush3.bf16.msra.mxu1 %v2565_v31 }
0x10c2   :  { %2570 = vmatprep.subr.bf16.mxu1 %v2569_v36 }
0x10c5   :  { %2572 = vmatpush3.bf16.msra.mxu1 %v2569_v36 }
0x114c   :  { %v1624_v23 = vpop.xlane.xlu1 %1623 }
0x114d   :  { %v1626_v24 = vmul.f32 0.03125, %v1624_v23  ;;  %v1621_v25 = vpop.xlane.xlu0 %1620 }
0x114e   :  { %v1625_v26 = vmul.f32 0.03125, %v1621_v25 }
0x114f   :  { %v1628_v27 = vsub.f32 %v1614_v19, %v1626_v24 }
0x1150   :  { %v1627_v28 = vsub.f32 %v1613_v20, %v1625_v26  ;;  %v2178_v26 = vld [vmem:[%s3212_s13 + $0x1] ss:$0 sm:$0xff] }
0x1151   :  { %v1630_v56 = vmul.f32 %v1628_v27, %v1628_v27 }
0x1152   :  { %v1629_v29 = vmul.f32 %v1627_v28, %v1627_v28 }
0x1153   :  { %v1634_v58 = vsel %vm71_vm0, %v1630_v56, 0.0 }
0x1154   :  { %v1631_v30 = vsel %vm71_vm0, %v1629_v29, 0.0 }
0x1155   :  { %1632 = vadd.xlane.f32.xlu0 %v1631_v30 }
0x1159   :  { %1635 = vadd.xlane.f32.xlu0 %v1634_v58 }
0x11e2   :  { %v1633_v37 = vpop.xlane.xlu0 %1632 }
0x11e3   :  { %v1637_v38 = vmul.f32 0.03125, %v1633_v37 }
0x11e5   :  { %v1639_v39 = vadd.f32 1e-12, %v1637_v38 }
0x11e6   :  { %v1636_v40 = vpop.xlane.xlu0 %1635 }
0x11e7   :  { %2698 = vrsqrt.f32 %v1639_v39  ;;  %v1638_v41 = vmul.f32 0.03125, %v1636_v40 }
0x11e9   :  { %v1640_v42 = vadd.f32 1e-12, %v1638_v41 }
0x11eb   :  { %2700 = vrsqrt.f32 %v1640_v42 }
0x11f1   :  { %v2699_v43 = vpop.eup %2698 }
0x11f2   :  { %v1643_v45 = vmul.f32 %v2699_v43, %v1627_v28  ;;  %v1924_v43 = vld [vmem:[%s3215_s16] sm:$0xff] }
0x11f4   :  { %v1651_v47 = vmul.f32 %v2159_v44, %v1643_v45 }
0x11f5   :  { %v2701_v48 = vpop.eup %2700 }
0x11f6   :  { %v1644_v49 = vmul.f32 %v2701_v48, %v1628_v27  ;;  %v1659_v51 = vadd.f32 %v2160_v46, %v1651_v47  ;;  %v1927_v47 = vld [vmem:[%s3215_s16 + $0x18] sm:$0xff]  ;;  %v2718_v48 = vmov 0.0|0.0  }
0x11f7   :  { %2589 = vmatprep.subr.bf16.mxu1 %v2718_v48 }
0x11f8   :  { %v1652_v52 = vmul.f32 %v2159_v44, %v1644_v49  ;;  %2425 = vmatprep.mubr.msk.f32.mxu1 %vm71_vm0, %v1659_v51  ;;  %v1925_v44 = vld [vmem:[%s3215_s16 + $0x8] sm:$0xff]  ;;  %v2720_v49 = vmov 0.0  }
0x11f9   :  { %v2590_v45 = vpack.c.bf16 %v1925_v44, %v1924_v43 }
0x11fa   :  { %v1660_v53 = vadd.f32 %v2160_v46, %v1652_v52  ;;  %v1926_v46 = vld [vmem:[%s3215_s16 + $0x10] sm:$0xff] }
0x11fc   :  { %2426 = vmatmul.mubr.msk.f32.vlgmr.msra.gmra.mrb[12].mxu1 %vm71_vm0, %v1660_v53 }
0x11fd   :  { %2455 = vmatprep.mubr.msk.f32.mxu1 %vm2719_vm4, %v2720_v49  ;;  %2591 = vmatpush3.bf16.msra.mxu1 %v2590_v45 }
0x11fe   :  { %2592 = vmatprep.subr.bf16.mxu1 %v2718_v48 }
0x12cf   :  { %v2427_v7 = vpop.f32.mrb[12].mxu1 }
0x12d0   :  { %v1752_v8 = vadd.f32 %v2427_v7, %v2166_v6  ;;  %v1746_v9 = vpop.f32.mrb[13].mxu1 }
0x12d1   :  { %v1747_v10 = vadd.f32 %v2166_v6, %v1746_v9 }
0x12d2   :  { %v1756_v11 = vmul.f32 %v1752_v8, %v1752_v8 }
0x12d3   :  { %v1755_v12 = vmul.f32 %v1747_v10, %v1747_v10 }
0x12d4   :  { %v1758_v13 = vmul.f32 %v1756_v11, %v1752_v8  ;;  %v2010_v11 = vld [vmem:[%s3216_s18 + $0x8] sm:$0xff] }
0x12d5   :  { %v1757_v14 = vmul.f32 %v1755_v12, %v1747_v10  ;;  %v2011_v12 = vld [vmem:[%s3216_s18 + $0x10] sm:$0xff] }
0x12d6   :  { %v1760_v15 = vmul.f32 0.044715, %v1758_v13 }
0x12d7   :  { %v1759_v16 = vmul.f32 0.044715, %v1757_v14  ;;  %v2012_v14 = vld [vmem:[%s3216_s18 + $0x18] sm:$0xff] }
0x12d8   :  { %v1762_v17 = vadd.f32 %v1760_v15, %v1752_v8  ;;  %v2599_v15 = vpack.c.bf16 %v2012_v14, %v2011_v12 }
0x12d9   :  { %v1761_v35 = vadd.f32 %v1759_v16, %v1747_v10  ;;  %v25_v16 = vstv %s3217_s19 }
0x12da   :  { %v1764_v33 = vmul.f32 0.7978846, %v1762_v17  ;;  %26 = vst [vmem:[#allocation2] sm:$0x1] %v25_v16  ;;  %v2185_v17 = vld [vmem:[%s3218_s17] ss:$0 sm:$0xff] }
0x12db   :  { %v1763_v50 = vmul.f32 0.7978846, %v1761_v35 }
0x12dc   :  { %2702 = vtanh.f32 %v1764_v33 }
0x12dd   :  { %2704 = vtanh.f32 %v1763_v50 }
0x12e6   :  { %v2703_v18 = vpop.eup %2702 }
0x12e7   :  { %v2705_v19 = vpop.eup %2704  ;;  %v1768_v20 = vadd.f32 1.0, %v2703_v18 }
0x12e8   :  { %v1767_v21 = vadd.f32 1.0, %v2705_v19  ;;  %v2187_v19 = vld [vmem:[#allocation2] ss:$0 sm:$0xff] }
0x12e9   :  { %v1770_v22 = vmul.f32 0.5, %v1768_v20 }
0x12ea   :  { %v1769_v23 = vmul.f32 0.5, %v1767_v21 }
0x12eb   :  { %v1772_v25 = vmul.f32 %v1770_v22, %v1752_v8 }
0x12ec   :  { %v1771_v24 = vmul.f32 %v1769_v23, %v1747_v10  ;;  %v2009_v10 = vld [vmem:[%s3216_s18] sm:$0xff] }
0x12ed   :  { %v2596_v13 = vpack.c.bf16 %v2010_v11, %v2009_v10 }
0x12ee   :  { %2444 = vmatprep.mubr.msk.f32.mxu0 %vm885_vm3, %v1771_v24 }
0x12ef   :  { %2445 = vmatmul.mubr.msk.f32.vlgmr.msra.gmra.mrb[16].mxu0 %vm885_vm3, %v1772_v25 }
0x13c2   :  { %v2446_v27 = vpop.f32.mrb[16].mxu0 }
0x13c3   :  { %v1868_v28 = vadd.f32 %v2446_v27, %v2178_v26  ;;  %v1862_v29 = vpop.f32.mrb[17].mxu0 }
0x13c4   :  { %v1863_v30 = vadd.f32 %v2178_v26, %v1862_v29 }
0x13c5   :  { %v1872_v56 = vadd.f32 %v1868_v28, %v1660_v53 }
0x13c6   :  { %v1871_v58 = vadd.f32 %v1863_v30, %v1659_v51  ;;  %v2593_v51 = vpack.c.bf16 %v1927_v47, %v1926_v46 }
0x13c7   :  { %v1880_v57 = vsel %vm71_vm0, %v1872_v56, 0.0 }
0x13c8   :  { %1881 = vadd.xlane.f32.xlu0 %v1880_v57  ;;  %v1877_v55 = vsel %vm71_vm0, %v1871_v58, 0.0  ;;  %2594 = vmatpush3.bf16.msra.mxu1 %v2593_v51 }
0x13c9   :  { %1878 = vadd.xlane.f32.xlu1 %v1877_v55  ;;  %2595 = vmatprep.subr.bf16.mxu1 %v2718_v48 }
0x1455   :  { %v1882_v31 = vpop.xlane.xlu0 %1881 }
0x1456   :  { %v1884_v32 = vmul.f32 0.03125, %v1882_v31  ;;  %v1879_v34 = vpop.xlane.xlu1 %1878 }
0x1457   :  { %v1883_v36 = vmul.f32 0.03125, %v1879_v34 }
0x1458   :  { %v1886_v37 = vsub.f32 %v1872_v56, %v1884_v32 }
0x1459   :  { %v1885_v38 = vsub.f32 %v1871_v58, %v1883_v36 }
0x145a   :  { %v1888_v39 = vmul.f32 %v1886_v37, %v1886_v37 }
0x145b   :  { %v1887_v40 = vmul.f32 %v1885_v38, %v1885_v38 }
0x145c   :  { %v1892_v41 = vsel %vm71_vm0, %v1888_v39, 0.0 }
0x145d   :  { %1893 = vadd.xlane.f32.xlu0 %v1892_v41  ;;  %v1889_v42 = vsel %vm71_vm0, %v1887_v40, 0.0 }
0x145e   :  { %1890 = vadd.xlane.f32.xlu1 %v1889_v42 }
0x14ea   :  { %v1894_v52 = vpop.xlane.xlu0 %1893 }
0x14eb   :  { %v1896_v53 = vmul.f32 0.03125, %v1894_v52  ;;  %v1891_v54 = vpop.xlane.xlu1 %1890 }
0x14ec   :  { %v1895_v59 = vmul.f32 0.03125, %v1891_v54 }
0x14ed   :  { %v1898_v60 = vadd.f32 1e-12, %v1896_v53 }
0x14ee   :  { %v1897_v61 = vadd.f32 1e-12, %v1895_v59 }
0x14ef   :  { %2706 = vrsqrt.f32 %v1898_v60 }
0x14f0   :  { %2708 = vrsqrt.f32 %v1897_v61 }
0x14f9   :  { %v2707_v62 = vpop.eup %2706 }
0x14fa   :  { %v2709_v0 = vpop.eup %2708  ;;  %v1902_v1 = vmul.f32 %v2707_v62, %v1886_v37 }
0x14fb   :  { %v1901_v3 = vmul.f32 %v2709_v0, %v1885_v38 }
0x14fc   :  { %v1910_v4 = vmul.f32 %v2183_v63, %v1902_v1 }
0x14fd   :  { %v1909_v5 = vmul.f32 %v2183_v63, %v1901_v3 }
0x14fe   :  { %v1918_v6 = vadd.f32 %v2184_v2, %v1910_v4 }
0x14ff   :  { %v1917_v7 = vadd.f32 %v2184_v2, %v1909_v5 }
0x1500   :  { %v1920_v8 = vrot.slane %v1918_v6, 7 }
0x1502   :  { %v1923_v9 = vsel %vm1922_vm5, %v1917_v7, %v1920_v8 }
0x1503   :  { %2456 = vmatmul.mubr.msk.f32.vlgmr.msra.gmra.mrb[14].mxu1 %vm71_vm0, %v1923_v9 }
0x1504   :  { %2466 = vmatprep.mubr.msk.f32.mxu1 %vm2719_vm4, %v2720_v49  ;;  %2597 = vmatpush3.bf16.msra.mxu1 %v2596_v13 }
0x1505   :  { %2598 = vmatprep.subr.bf16.mxu1 %v2718_v48 }
0x1508   :  { %2600 = vmatpush3.bf16.msra.mxu1 %v2599_v15 }
0x15d6   :  { %v2004_v35 = vpop.f32.mrb[14].mxu1 }
0x15d7   :  { %v2005_v33 = vadd.f32 %v2185_v17, %v2004_v35  ;;  %v2457_v50 = vpop.f32.mrb[15].mxu1 }
0x15d9   :  { %2710 = vtanh.f32 %v2005_v33 }
0x15e3   :  { %v2711_v18 = vpop.eup %2710 }
0x15e4   :  { %2467 = vmatmul.mubr.msk.f32.vlgmr.msra.gmra.mrb[16].mxu1 %vm71_vm0, %v2711_v18 }
0x16b7   :  { %v2089_v20 = vpop.f32.mrb[16].mxu1 }
0x16b8   :  { %v2090_v21 = vadd.f32 %v2187_v19, %v2089_v20  ;;  %v2468_v22 = vpop.f32.mrb[17].mxu1 }
0x16ba   :  { %2094 = vst.msk [vmem:[%s3219_s20] sm:$0x3] %vm2093_vm6, %v2090_v21 }

</bundles_post_ra>
